<compile_context>
chip_gen: v7x
topology: tpu7x:2x2x1
jax: 0.10.0
libtpu: 0.0.40
codegen_flags: <defaults>
</compile_context>

<pallas_src>
import functools

import jax
import jax.numpy as jnp
from jax import lax
from jax.experimental import pallas as pl
from jax.experimental.pallas import tpu as pltpu


# --------------------------------------------------------------------------
# Kernel
# --------------------------------------------------------------------------
def _critic_kernel(x_ref, w1_ref, b1_ref, w2_ref, b2_ref, w3_ref, b3_ref,
                   o_ref, *, tanh_dtype):
    cdt = w1_ref.dtype                       # compute dtype (bf16 or f32)

    # In-kernel cast of the activation (hidden under the MXU work).
    x = x_ref[...].astype(cdt)

    # Layer 1: (bb, S) @ (S, H1) + b1 -> tanh      (MXU + VPU/EUP)
    # NOTE: K = state_size (~32) under-utilizes the MXU depth; nothing to fix
    # in-kernel — this is why bf16 matmuls and a large bb matter most here.
    h1 = jnp.dot(x, w1_ref[...], preferred_element_type=jnp.float32)
    h1 = jnp.tanh((h1 + b1_ref[...]).astype(tanh_dtype)).astype(cdt)

    # Layer 2: (bb, H1) @ (H1, H2) + b2 -> tanh    (MXU + VPU/EUP)
    h2 = jnp.dot(h1, w2_ref[...], preferred_element_type=jnp.float32)
    h2 = jnp.tanh((h2 + b2_ref[...]).astype(tanh_dtype)).astype(cdt)

    # Head: v[b] = sum_h w3[0,h] * h2[b,h] + b3.
    # Explicit dot_general contracting the LAST dims of both operands:
    # (1, H2) x (bb, H2) -> (1, bb).  The MXU consumes h2 in transposed-RHS
    # form (no materialized XLU transpose) and the result is already a
    # lane-dense row -> unmasked stores, no (bb, 1) lane-padded tile.
    v = lax.dot_general(w3_ref[...], h2,
                        dimension_numbers=(((1,), (1,)), ((), ())),
                        preferred_element_type=jnp.float32)
    o_ref[0] = v + b3_ref[0]                 # b3 is a scalar in SMEM


# --------------------------------------------------------------------------
# Wrapper
# --------------------------------------------------------------------------
def _round_up(v, m):
    return -(-v // m) * m


def _select_batch_tile(B, cap):
    """Pick a 128-multiple batch tile <= cap that (1) minimizes batch padding,
    (2) prefers >=2 grid steps (v7x megacore) when that adds no padding,
    (3) prefers larger tiles (fewer ~0.35us grid steps) among ties."""
    cap = max(128, (cap // 128) * 128)
    bp_full = _round_up(B, 128)
    best_key, best_bb = None, 128
    for c in range(128, min(cap, bp_full) + 1, 128):
        nb = -(-B // c)
        Bp = nb * c
        key = (Bp, 0 if nb >= 2 else 1, -c)
        if best_key is None or key < best_key:
            best_key, best_bb = key, c
    return best_bb


def _default_tanh_dtype(compute_dtype):
    """bf16 tanh only where the EUP/VPU has a bf16 path (v6e / v7x)."""
    if jnp.dtype(compute_dtype) == jnp.dtype(jnp.float32):
        return jnp.float32
    try:
        kind = jax.devices()[0].device_kind.lower()
    except Exception:  # e.g. interpret mode / no device info
        return jnp.float32
    if any(tag in kind for tag in ("v2", "v3", "v4", "v5")):
        return jnp.float32
    return compute_dtype


def prepare_params(params, compute_dtype=jnp.bfloat16):
    """Cast weights to the compute dtype ONCE (outside the hot loop).
    Biases stay f32 (added to the f32 matmul accumulator); b3 -> (1,) scalar."""
    w1, b1, w2, b2, w3, b3 = params
    return (w1.astype(compute_dtype),
            b1.reshape(1, -1).astype(jnp.float32),
            w2.astype(compute_dtype),
            b2.reshape(1, -1).astype(jnp.float32),
            w3.reshape(1, -1).astype(compute_dtype),
            b3.reshape((1,)).astype(jnp.float32))


def a2c_critic_forward(x, params, *, block_b=1024,
                       compute_dtype=jnp.bfloat16, tanh_dtype=None):
    """Critic MLP forward. x: (B, state_size) -> (B, 1) float32.

    params = (w1, b1, w2, b2, w3, b3) with
      w1: (S, H1)   b1: (1, H1) / (H1,)
      w2: (H1, H2)  b2: (1, H2) / (H2,)
      w3: (1, H2)   b3: (1,)          # head weight in PyTorch (out, in) layout

    compute_dtype: jnp.bfloat16 (default, MXU-native; f32 accumulation) or
    jnp.float32 (bit-faithful-ish to the torch module, ~1e-4 tolerance).
    bf16 outputs match the f32 reference to ~1e-2 relative (tanh-bounded MLP).
    """
    w1, b1, w2, b2, w3, b3 = params
    B, S = x.shape
    H1 = w1.shape[1]
    H2 = w2.shape[1]

    if tanh_dtype is None:
        tanh_dtype = _default_tanh_dtype(compute_dtype)

    # Coerce params (trace-time no-ops when prepare_params() was already used).
    w1 = w1.astype(compute_dtype)
    w2 = w2.astype(compute_dtype)
    w3 = w3.reshape(1, H2).astype(compute_dtype)
    b1 = b1.reshape(1, H1).astype(jnp.float32)
    b2 = b2.reshape(1, H2).astype(jnp.float32)
    b3 = b3.reshape((1,)).astype(jnp.float32)

    # Balanced, 128-aligned batch tile (minimal padding, megacore-friendly).
    bb = _select_batch_tile(B, block_b)
    nb = pl.cdiv(B, bb)
    Bp = nb * bb
    x_p = x if Bp == B else jnp.pad(x, ((0, Bp - B), (0, 0)))
    # NOTE: x is NOT cast here — the cast happens inside the kernel.

    itemsize = jnp.dtype(compute_dtype).itemsize
    cost = pl.CostEstimate(
        flops=2 * Bp * (S * H1 + H1 * H2 + H2),
        transcendentals=Bp * (H1 + H2),
        bytes_accessed=(Bp * S * x_p.dtype.itemsize
                        + (S * H1 + H1 * H2 + H2) * itemsize
                        + (H1 + H2 + 1) * 4
                        + Bp * 4),
    )

    kernel = functools.partial(_critic_kernel, tanh_dtype=tanh_dtype)

    out = pl.pallas_call(
        kernel,
        # Lane-dense output: one (1, bb) row per grid step (unmasked vst).
        out_shape=jax.ShapeDtypeStruct((nb, 1, bb), jnp.float32),
        grid_spec=pl.GridSpec(
            grid=(nb,),
            in_specs=[
                pl.BlockSpec((bb, S), lambda i: (i, 0)),    # x batch tile
                pl.BlockSpec((S, H1), lambda i: (0, 0)),    # w1 (VMEM-resident)
                pl.BlockSpec((1, H1), lambda i: (0, 0)),    # b1
                pl.BlockSpec((H1, H2), lambda i: (0, 0)),   # w2 (VMEM-resident)
                pl.BlockSpec((1, H2), lambda i: (0, 0)),    # b2
                pl.BlockSpec((1, H2), lambda i: (0, 0)),    # w3 row vector
                pl.BlockSpec(memory_space=pltpu.SMEM),      # b3 scalar
            ],
            out_specs=pl.BlockSpec((1, 1, bb), lambda i: (i, 0, 0)),
        ),
        compiler_params=pltpu.CompilerParams(
            dimension_semantics=("parallel",)),
        cost_estimate=cost,
    )(x_p, w1, b1, w2, b2, w3, b3)

    # (nb, 1, bb) -> (Bp, 1) -> strip batch padding.
    return out.reshape(Bp, 1)[:B]


# --------------------------------------------------------------------------
# Params init + pure-JAX reference
# --------------------------------------------------------------------------
def init_params(key, state_size, hidsize1=512, hidsize2=256):
    """Deterministic parameter init (PyTorch-Linear-style uniform bounds)."""
    ks = jax.random.split(key, 6)

    def uinit(k, shape, fan_in):
        bound = 1.0 / jnp.sqrt(fan_in)
        return jax.random.uniform(k, shape, jnp.float32, -bound, bound)

    w1 = uinit(ks[0], (state_size, hidsize1), state_size)
    b1 = uinit(ks[1], (1, hidsize1), state_size)
    w2 = uinit(ks[2], (hidsize1, hidsize2), hidsize1)
    b2 = uinit(ks[3], (1, hidsize2), hidsize1)
    w3 = uinit(ks[4], (1, hidsize2), hidsize2)   # head weight, (out, in) layout
    b3 = uinit(ks[5], (1,), hidsize2)
    return (w1, b1, w2, b2, w3, b3)


def reference_forward(x, params):
    w1, b1, w2, b2, w3, b3 = params
    h1 = jnp.tanh(x @ w1 + b1)
    h2 = jnp.tanh(h1 @ w2 + b2)
    return h2 @ w3.T + b3            # (B, 1)


# --------------------------------------------------------------------------
# Self-test
# --------------------------------------------------------------------------
if __name__ == "__main__":
    key = jax.random.PRNGKey(0)
    k_x, k_p = jax.random.split(key)

    batch = 8
    state_size = 32
    x = jax.random.normal(k_x, (batch, state_size), jnp.float32)
    params = init_params(k_p, state_size, hidsize1=512, hidsize2=256)
    ref = reference_forward(x, params)

    # f32 parity path (faithful to the PyTorch module) — strict check.
    out_f32 = jax.block_until_ready(
        a2c_critic_forward(x, prepare_params(params, jnp.float32),
                           compute_dtype=jnp.float32))
    assert out_f32.shape == (batch, 1)
    assert jnp.allclose(out_f32, ref, atol=1e-4, rtol=1e-4), "f32 mismatch"

    # Default bf16 fast path (weights pre-cast once) — ~1e-2-level tolerance.
    params_bf16 = prepare_params(params, jnp.bfloat16)
    out_bf16 = jax.block_until_ready(a2c_critic_forward(x, params_bf16))
    assert out_bf16.shape == (batch, 1)
    assert jnp.allclose(out_bf16, ref, atol=5e-2, rtol=5e-2), "bf16 path diverged"

    # Ragged, multi-tile batch: exercises padding + a multi-step 'parallel' grid
    # with the balanced tile selection (B=300 -> 3 tiles of 128, Bp=384).
    x2 = jax.random.normal(k_x, (300, state_size), jnp.float32)
    ref2 = reference_forward(x2, params)
    out2 = jax.block_until_ready(
        a2c_critic_forward(x2, prepare_params(params, jnp.float32),
                           compute_dtype=jnp.float32))
    assert out2.shape == (300, 1)
    assert jnp.allclose(out2, ref2, atol=1e-4, rtol=1e-4), "ragged f32 mismatch"

    out2_bf16 = jax.block_until_ready(a2c_critic_forward(x2, params_bf16))
    assert out2_bf16.shape == (300, 1)
    assert jnp.allclose(out2_bf16, ref2, atol=5e-2, rtol=5e-2), "ragged bf16 diverged"

    print("KERNEL_OK")
</pallas_src>

<mosaic_0001>
module attributes {stable_mosaic.version = 11 : i64} {
  func.func @_critic_kernel(%arg0: i32, %arg1: memref<128x32xf32, #tpu.memory_space<vmem>>, %arg2: memref<32x512xf32, #tpu.memory_space<vmem>>, %arg3: memref<1x512xf32, #tpu.memory_space<vmem>>, %arg4: memref<512x256xf32, #tpu.memory_space<vmem>>, %arg5: memref<1x256xf32, #tpu.memory_space<vmem>>, %arg6: memref<1x256xf32, #tpu.memory_space<vmem>>, %arg7: memref<1xf32, #tpu.memory_space<smem>>, %arg8: memref<1x1x128xf32, #tpu.memory_space<vmem>>) attributes {dimension_semantics = [#tpu.dimension_semantics<parallel>], iteration_bounds = array<i64: 1>, scalar_prefetch = 0 : i64, scratch_operands = 0 : i64, tpu.core_type = #tpu.core_type<tc>, window_params = [{transform_indices = @transform_0, window_bounds = array<i64: 128, 32>}, {pipeline_mode = #tpu.pipeline_mode<synchronous>, transform_indices = @transform_1, window_bounds = array<i64: 32, 512>}, {pipeline_mode = #tpu.pipeline_mode<synchronous>, transform_indices = @transform_2, window_bounds = array<i64: 1, 512>}, {pipeline_mode = #tpu.pipeline_mode<synchronous>, transform_indices = @transform_3, window_bounds = array<i64: 512, 256>}, {pipeline_mode = #tpu.pipeline_mode<synchronous>, transform_indices = @transform_4, window_bounds = array<i64: 1, 256>}, {pipeline_mode = #tpu.pipeline_mode<synchronous>, transform_indices = @transform_5, window_bounds = array<i64: 1, 256>}, {transform_indices = @transform_6, window_bounds = array<i64: 1>}, {transform_indices = @transform_7, window_bounds = array<i64: 1, 1, 128>}]} {
    %c0 = arith.constant 0 : index
    %c0_0 = arith.constant 0 : index
    %0 = vector.load %arg1[%c0, %c0_0] : memref<128x32xf32, #tpu.memory_space<vmem>>, vector<128x32xf32>
    %c0_1 = arith.constant 0 : index
    %c0_2 = arith.constant 0 : index
    %1 = vector.load %arg2[%c0_1, %c0_2] : memref<32x512xf32, #tpu.memory_space<vmem>>, vector<32x512xf32>
    %cst = arith.constant dense<0.000000e+00> : vector<128x512xf32>
    %2 = tpu.matmul %0, %1, %cst {dimension_numbers = #tpu.dot_dimension_numbers<[1], [0], [0], [1], [0, 0, 1, 1], [], []>} : vector<128x32xf32>, vector<32x512xf32>, vector<128x512xf32> -> vector<128x512xf32>
    %c0_3 = arith.constant 0 : index
    %c0_4 = arith.constant 0 : index
    %3 = vector.load %arg3[%c0_3, %c0_4] : memref<1x512xf32, #tpu.memory_space<vmem>>, vector<1x512xf32>
    %4 = vector.broadcast %3 : vector<1x512xf32> to vector<128x512xf32>
    %5 = arith.addf %2, %4 : vector<128x512xf32>
    %6 = math.tanh %5 : vector<128x512xf32>
    %c0_5 = arith.constant 0 : index
    %c0_6 = arith.constant 0 : index
    %7 = vector.load %arg4[%c0_5, %c0_6] : memref<512x256xf32, #tpu.memory_space<vmem>>, vector<512x256xf32>
    %cst_7 = arith.constant dense<0.000000e+00> : vector<128x256xf32>
    %8 = tpu.matmul %6, %7, %cst_7 {dimension_numbers = #tpu.dot_dimension_numbers<[1], [0], [0], [1], [0, 0, 1, 1], [], []>} : vector<128x512xf32>, vector<512x256xf32>, vector<128x256xf32> -> vector<128x256xf32>
    %c0_8 = arith.constant 0 : index
    %c0_9 = arith.constant 0 : index
    %9 = vector.load %arg5[%c0_8, %c0_9] : memref<1x256xf32, #tpu.memory_space<vmem>>, vector<1x256xf32>
    %10 = vector.broadcast %9 : vector<1x256xf32> to vector<128x256xf32>
    %11 = arith.addf %8, %10 : vector<128x256xf32>
    %12 = math.tanh %11 : vector<128x256xf32>
    %c0_10 = arith.constant 0 : index
    %c0_11 = arith.constant 0 : index
    %13 = vector.load %arg6[%c0_10, %c0_11] : memref<1x256xf32, #tpu.memory_space<vmem>>, vector<1x256xf32>
    %cst_12 = arith.constant dense<0.000000e+00> : vector<1x128xf32>
    %14 = tpu.matmul %13, %12, %cst_12 {dimension_numbers = #tpu.dot_dimension_numbers<[1], [1], [0], [0], [0, 0, 1, 0], [], []>} : vector<1x256xf32>, vector<128x256xf32>, vector<1x128xf32> -> vector<1x128xf32>
    %c0_13 = arith.constant 0 : index
    %15 = memref.load %arg7[%c0_13] : memref<1xf32, #tpu.memory_space<smem>>
    %16 = vector.broadcast %15 : f32 to vector<1x128xf32>
    %17 = arith.addf %14, %16 : vector<1x128xf32>
    %c0_14 = arith.constant 0 : index
    %c0_15 = arith.constant 0 : index
    %c0_16 = arith.constant 0 : index
    %18 = vector.load %arg8[%c0_14, %c0_15, %c0_16] : memref<1x1x128xf32, #tpu.memory_space<vmem>>, vector<1x1x128xf32>
    %19 = vector.shape_cast %18 : vector<1x1x128xf32> to vector<1x128xf32>
    %20 = vector.shape_cast %17 : vector<1x128xf32> to vector<1x1x128xf32>
    tpu.vector_store %arg8[%c0_14, %c0_15, %c0_16], %20 {strides = array<i32>} : memref<1x1x128xf32, #tpu.memory_space<vmem>>, vector<1x1x128xf32>,
    return
  }
  func.func @transform_0(%arg0: i32) -> (i32, i32) {
    %c0_i32 = arith.constant 0 : i32
    %c0_i32_0 = arith.constant 0 : i32
    return %arg0, %c0_i32 : i32, i32
  }
  func.func @transform_1(%arg0: i32) -> (i32, i32) {
    %c0_i32 = arith.constant 0 : i32
    %c0_i32_0 = arith.constant 0 : i32
    %c0_i32_1 = arith.constant 0 : i32
    return %c0_i32, %c0_i32_0 : i32, i32
  }
  func.func @transform_2(%arg0: i32) -> (i32, i32) {
    %c0_i32 = arith.constant 0 : i32
    %c0_i32_0 = arith.constant 0 : i32
    %c0_i32_1 = arith.constant 0 : i32
    return %c0_i32, %c0_i32_0 : i32, i32
  }
  func.func @transform_3(%arg0: i32) -> (i32, i32) {
    %c0_i32 = arith.constant 0 : i32
    %c0_i32_0 = arith.constant 0 : i32
    %c0_i32_1 = arith.constant 0 : i32
    return %c0_i32, %c0_i32_0 : i32, i32
  }
  func.func @transform_4(%arg0: i32) -> (i32, i32) {
    %c0_i32 = arith.constant 0 : i32
    %c0_i32_0 = arith.constant 0 : i32
    %c0_i32_1 = arith.constant 0 : i32
    return %c0_i32, %c0_i32_0 : i32, i32
  }
  func.func @transform_5(%arg0: i32) -> (i32, i32) {
    %c0_i32 = arith.constant 0 : i32
    %c0_i32_0 = arith.constant 0 : i32
    %c0_i32_1 = arith.constant 0 : i32
    return %c0_i32, %c0_i32_0 : i32, i32
  }
  func.func @transform_6(%arg0: i32) -> i32 {
    %c0_i32 = arith.constant 0 : i32
    %c0_i32_0 = arith.constant 0 : i32
    return %c0_i32 : i32
  }
  func.func @transform_7(%arg0: i32) -> (i32, i32, i32) {
    %c0_i32 = arith.constant 0 : i32
    %c0_i32_0 = arith.constant 0 : i32
    %c0_i32_1 = arith.constant 0 : i32
    return %arg0, %c0_i32, %c0_i32_0 : i32, i32, i32
  }
}

</mosaic_0001>

<bundles_post_ra>
// kernel: tpu_custom_call.1
= control target key start
LH: loop header
LB: loop body
LE: loop exit
PB: predicated region body
PF: predicated region fallthrough
CT: control target
= control target key end

     0   :  { %13 = vsyncpa [#allocation4], 0  ;;  %s2005_s0 = inlined_call_operand.vmem [shape: f32[128,32], index: 0, kind: input, shape index: {}]   ;;  %s2006_s1 = inlined_call_operand.vmem [shape: f32[32,512], index: 1, kind: input, shape index: {}]   ;;  %s2007_s2 = inlined_call_operand.vmem [shape: f32[1,512], index: 2, kind: input, shape index: {}]   ;;  %s2008_s3 = inlined_call_operand.hbm [shape: f32[512,256], index: 3, kind: input, shape index: {}]   ;;  %s2009_s4 = inlined_call_operand.vmem [shape: f32[1,256], index: 4, kind: input, shape index: {}]   ;;  %s2010_s5 = inlined_call_operand.vmem [shape: f32[1,256], index: 5, kind: input, shape index: {}]   ;;  %s2011_s6 = inlined_call_operand.<no memory space> [shape: f32[1], index: 6, kind: input, shape index: {}]   ;;  %s2012_s7 = inlined_call_operand.hbm [shape: f32[1,1,128], index: 7, kind: output, shape index: {}]  }
   0x1   :  { %14 = vsyncpa [#allocation5], 0  ;;  %s1642_s24 = smov [#allocation3]   ;;  %s1594_s28 = scalar_lea.hbm %s2008_s3, 16384 }
   0x2   :  { %s26_s25 = sshll.u32 %s1642_s24, 4  ;;  %p1595_p0 = scmp.ne.s32.totalorder %s2008_s3, %s1594_s28  ;;  %s27_s25 = int_to_ptr.vmem [resolvable:$true] %s26_s25 }
   0x3   :  { %p1598_p1 = scmp.lt.u32.totalorder %s1594_s28, %s2008_s3 }
   0x5   :  { %p1600_p2 = pnand %p1598_p1, %p1595_p0 }
   0x7   :  { %1603 = shalt.err (!%p1600_p2)
}
   0x8   :  { %s1604_s10 = scalar_lea.vmem %s27_s25, 16384  ;;  %p1609_p4 = scmp.lt.s32.totalorder %s27_s25, %s27_s25 }
   0x9   :  { %p1605_p3 = scmp.ne.s32.totalorder %s27_s25, %s1604_s10  ;;  %p1610_p5 = scmp.lt.s32.totalorder %s1604_s10, %s1604_s10 }
   0xb   :  { %p1611_p6 = por %p1610_p5, %p1609_p4 }
   0xd   :  { %p1612_p7 = pnand %p1611_p6, %p1605_p3 }
   0xf   :  { %1615 = shalt.err (!%p1612_p7)
}
  0x10   :  { %s1643_s11 = smov 256   ;;  %s1644_s12 = smov 16  }
  0x11   :  { %32 = dma.hbm_to_vmem [thread:$0]  %s2008_s3, 16384, %s27_s25, [#allocation4], %s1643_s11, %s1643_s11, %s1644_s12  }
  0x12   :  { %1638 = dma.done.wait [#allocation4], 16384  }
  0x13   :  { %1639 = vsyncadd [#allocation4], 4294950912  ;;  %v1645_v0 = vmov 0.0   ;;  %v59_v1 = vld [vmem:[%s2006_s1 + $0x8] sm:$0xff]  ;;  %v61_v3 = vld [vmem:[%s2006_s1 + $0x18] sm:$0xff]  ;;  %vm96_vm0 = vcmask 261120  }
  0x14   :  { %209 = vmatprep.mubr.f32.mxu0 %v1645_v0  ;;  %370 = vmatprep.mubr.f32.mxu1 %v1645_v0  ;;  %v63_v2 = vld [vmem:[%s2006_s1 + $0x28] sm:$0xff]  ;;  %v65_v5 = vld [vmem:[%s2006_s1 + $0x38] sm:$0xff]  ;;  %v58_v6 = vld [vmem:[%s2006_s1] sm:$0xff]  ;;  %s1646_s9 = smov [#allocation6]  }
  0x15   :  { %v1157_v4 = vpack.c.bf16 %v63_v2, %v59_v1  ;;  %v62_v7 = vld [vmem:[%s2006_s1 + $0x20] sm:$0xff]  ;;  %v1165_v8 = vpack.c.bf16 %v65_v5, %v61_v3  ;;  %v60_v10 = vld [vmem:[%s2006_s1 + $0x10] sm:$0xff]  ;;  %v67_v12 = vld [vmem:[%s2006_s1 + $0x48] sm:$0xff]  ;;  %s1116_s10 = sshll.u32 %s1646_s9, 4  ;;  %s1117_s10 = int_to_ptr.vmem [resolvable:$true] %s1116_s10 }
  0x16   :  { %v1159_v9 = vpack.c.bf16 %v62_v7, %v58_v6  ;;  %v64_v11 = vld [vmem:[%s2006_s1 + $0x30] sm:$0xff]  ;;  %v71_v14 = vld [vmem:[%s2006_s1 + $0x68] sm:$0xff]  ;;  %v69_v15 = vld [vmem:[%s2006_s1 + $0x58] sm:$0xff]  ;;  %s1616_s11 = scalar_lea.vmem %s1117_s10, 16  ;;  %s1620_s12 = scalar_lea.vmem %s1117_s10, 32 }
  0x17   :  { %1158 = vmatprep.subr.bf16.mxu0 %v1157_v4  ;;  %v1167_v13 = vpack.c.bf16 %v64_v11, %v60_v10  ;;  %v73_v16 = vld [vmem:[%s2006_s1 + $0x78] sm:$0xff]  ;;  %1166 = vmatprep.subr.bf16.mxu1 %v1165_v8  ;;  %v1161_v17 = vpack.c.bf16 %v71_v14, %v67_v12  ;;  %v66_v19 = vld [vmem:[%s2006_s1 + $0x40] sm:$0xff]  ;;  %v68_v21 = vld [vmem:[%s2006_s1 + $0x50] sm:$0xff]  ;;  %p1617_p8 = scmp.ne.s32.totalorder %s1117_s10, %s1616_s11  ;;  %p1621_p9 = scmp.lt.s32.totalorder %s1117_s10, %s1117_s10 }
  0x18   :  { %1160 = vmatpush1.bf16.msra.mxu0 %v1159_v9  ;;  %v1169_v18 = vpack.c.bf16 %v73_v16, %v69_v15  ;;  %v70_v20 = vld [vmem:[%s2006_s1 + $0x60] sm:$0xff]  ;;  %v72_v23 = vld [vmem:[%s2006_s1 + $0x70] sm:$0xff]  ;;  %v43_v26 = vld [vmem:[%s2005_s0 + $0x8] sm:$0xff]  ;;  %p1622_p10 = scmp.lt.s32.totalorder %s1620_s12, %s1616_s11 }
  0x19   :  { %1168 = vmatpush1.bf16.msra.mxu1 %v1167_v13  ;;  %v1163_v22 = vpack.c.bf16 %v70_v20, %v66_v19  ;;  %1162 = vmatprep.subr.bf16.mxu0 %v1161_v17  ;;  %v1171_v24 = vpack.c.bf16 %v72_v23, %v68_v21  ;;  %v42_v25 = vld [vmem:[%s2005_s0] sm:$0xff]  ;;  %v532_v27 = vld [vmem:[#allocation3 + $0x8] sm:$0xff]  ;;  %v534_v28 = vld [vmem:[#allocation3 + $0x18] sm:$0xff] }
  0x1a   :  { %1170 = vmatprep.subr.bf16.mxu1 %v1169_v18  ;;  %v596_v29 = vld [vmem:[#allocation3 + $0x208] sm:$0xff]  ;;  %v598_v30 = vld [vmem:[#allocation3 + $0x218] sm:$0xff]  ;;  %v1173_v31 = vpack.c.bf16 %v534_v28, %v532_v27  ;;  %v531_v33 = vld [vmem:[#allocation3] sm:$0xff]  ;;  %p1623_p11 = por %p1622_p10, %p1621_p9 }
  0x1b   :  { %v1237_v32 = vpack.c.bf16 %v598_v30, %v596_v29  ;;  %v533_v34 = vld [vmem:[#allocation3 + $0x10] sm:$0xff]  ;;  %v595_v35 = vld [vmem:[#allocation3 + $0x200] sm:$0xff]  ;;  %v536_v38 = vld [vmem:[#allocation3 + $0x28] sm:$0xff] }
  0x1c   :  { %1164 = vmatpush1.bf16.msra.mxu0 %v1163_v22  ;;  %v1175_v36 = vpack.c.bf16 %v533_v34, %v531_v33  ;;  %v597_v37 = vld [vmem:[#allocation3 + $0x210] sm:$0xff]  ;;  %v538_v39 = vld [vmem:[#allocation3 + $0x38] sm:$0xff]  ;;  %v600_v43 = vld [vmem:[#allocation3 + $0x228] sm:$0xff]  ;;  %p1624_p12 = pnand %p1623_p11, %p1617_p8 }
  0x1d   :  { %1172 = vmatpush1.bf16.msra.mxu1 %v1171_v24  ;;  %v44_v40 = vld [vmem:[%s2005_s0 + $0x10] sm:$0xff]  ;;  %1238 = vmatprep.subr.bf16.mxu0 %v1237_v32  ;;  %v1239_v41 = vpack.c.bf16 %v597_v37, %v595_v35  ;;  %v1177_v42 = vpack.c.bf16 %v538_v39, %v536_v38  ;;  %v602_v44 = vld [vmem:[#allocation3 + $0x238] sm:$0xff]  ;;  %v535_v45 = vld [vmem:[#allocation3 + $0x20] sm:$0xff] }
  0x1e   :  { %1174 = vmatprep.subr.bf16.mxu1 %v1173_v31  ;;  %v1241_v46 = vpack.c.bf16 %v602_v44, %v600_v43  ;;  %v537_v47 = vld [vmem:[#allocation3 + $0x30] sm:$0xff]  ;;  %v599_v48 = vld [vmem:[#allocation3 + $0x220] sm:$0xff]  ;;  %v540_v51 = vld [vmem:[#allocation3 + $0x48] sm:$0xff] }
  0x1f   :  { %1125 = vmatmul.mubr.msk.f32.vlgmr.msra.gmra.mrb[0].mxu0 %vm96_vm0, %v42_v25  ;;  %v601_v49 = vld [vmem:[#allocation3 + $0x230] sm:$0xff]  ;;  %v1179_v50 = vpack.c.bf16 %v537_v47, %v535_v45  ;;  %v542_v52 = vld [vmem:[#allocation3 + $0x58] sm:$0xff]  ;;  %v604_v53 = vld [vmem:[#allocation3 + $0x248] sm:$0xff] }
  0x20   :  { %1141 = vmatmul.mubr.msk.f32.vlgmr.msra.gmra.mrb[0].mxu1 %vm96_vm0, %v42_v25  ;;  %215 = vmatprep.mubr.f32.mxu0 %v1645_v0  ;;  %v1243_v54 = vpack.c.bf16 %v601_v49, %v599_v48  ;;  %v606_v55 = vld [vmem:[#allocation3 + $0x258] sm:$0xff]  ;;  %v539_v56 = vld [vmem:[#allocation3 + $0x40] sm:$0xff]  ;;  %v541_v57 = vld [vmem:[#allocation3 + $0x50] sm:$0xff]  ;;  %v1181_v58 = vpack.c.bf16 %v542_v52, %v540_v51 }
  0x21   :  { %376 = vmatprep.mubr.f32.mxu1 %v1645_v0  ;;  %1176 = vmatpush1.bf16.msra.mxu1 %v1175_v36  ;;  %v1245_v59 = vpack.c.bf16 %v606_v55, %v604_v53  ;;  %v603_v60 = vld [vmem:[#allocation3 + $0x240] sm:$0xff]  ;;  %v605_v61 = vld [vmem:[#allocation3 + $0x250] sm:$0xff]  ;;  %v544_v62 = vld [vmem:[#allocation3 + $0x68] sm:$0xff]  ;;  %v1183_v63 = vpack.c.bf16 %v541_v57, %v539_v56 }
  0x22   :  { %1240 = vmatpush1.bf16.msra.mxu0 %v1239_v41  ;;  %1178 = vmatprep.subr.bf16.mxu1 %v1177_v42  ;;  %v546_v1 = vld [vmem:[#allocation3 + $0x78] sm:$0xff]  ;;  %v608_v2 = vld [vmem:[#allocation3 + $0x268] sm:$0xff]  ;;  %v543_v5 = vld [vmem:[#allocation3 + $0x60] sm:$0xff]  ;;  %v1247_v7 = vpack.c.bf16 %v605_v61, %v603_v60 }
  0x23   :  { %1126 = vmatmul.mubr.msk.f32.gmra.mrb[2].mxu0 %vm96_vm0, %v43_v26  ;;  %1242 = vmatprep.subr.bf16.mxu0 %v1241_v46  ;;  %v610_v3 = vld [vmem:[#allocation3 + $0x278] sm:$0xff]  ;;  %v545_v6 = vld [vmem:[#allocation3 + $0x70] sm:$0xff]  ;;  %v1185_v8 = vpack.c.bf16 %v546_v1, %v544_v62  ;;  %v607_v10 = vld [vmem:[#allocation3 + $0x260] sm:$0xff] }
  0x24   :  { %1142 = vmatmul.mubr.msk.f32.gmra.mrb[2].mxu1 %vm96_vm0, %v43_v26  ;;  %221 = vmatprep.mubr.f32.mxu0 %v1645_v0  ;;  %v45_v4 = vld [vmem:[%s2005_s0 + $0x18] sm:$0xff]  ;;  %v1249_v9 = vpack.c.bf16 %v610_v3, %v608_v2  ;;  %v609_v11 = vld [vmem:[#allocation3 + $0x270] sm:$0xff]  ;;  %v548_v12 = vld [vmem:[#allocation3 + $0x88] sm:$0xff]  ;;  %v1187_v13 = vpack.c.bf16 %v545_v6, %v543_v5 }
  0x25   :  { %382 = vmatprep.mubr.f32.mxu1 %v1645_v0  ;;  %1180 = vmatpush1.bf16.msra.mxu1 %v1179_v50  ;;  %v550_v14 = vld [vmem:[#allocation3 + $0x98] sm:$0xff]  ;;  %v612_v15 = vld [vmem:[#allocation3 + $0x288] sm:$0xff]  ;;  %v46_v17 = vld [vmem:[%s2005_s0 + $0x20] sm:$0xff]  ;;  %v1251_v20 = vpack.c.bf16 %v609_v11, %v607_v10 }
  0x26   :  { %1244 = vmatpush1.bf16.msra.mxu0 %v1243_v54  ;;  %1182 = vmatprep.subr.bf16.mxu1 %v1181_v58  ;;  %v614_v16 = vld [vmem:[#allocation3 + $0x298] sm:$0xff]  ;;  %v547_v18 = vld [vmem:[#allocation3 + $0x80] sm:$0xff]  ;;  %v549_v19 = vld [vmem:[#allocation3 + $0x90] sm:$0xff]  ;;  %v1189_v21 = vpack.c.bf16 %v550_v14, %v548_v12 }
  0x27   :  { %1127 = vmatmul.mubr.msk.f32.gmra.mrb[4].mxu0 %vm96_vm0, %v44_v40  ;;  %1246 = vmatprep.subr.bf16.mxu0 %v1245_v59  ;;  %v1253_v22 = vpack.c.bf16 %v614_v16, %v612_v15  ;;  %v611_v23 = vld [vmem:[#allocation3 + $0x280] sm:$0xff]  ;;  %v613_v24 = vld [vmem:[#allocation3 + $0x290] sm:$0xff]  ;;  %v552_v25 = vld [vmem:[#allocation3 + $0xa8] sm:$0xff]  ;;  %v1191_v26 = vpack.c.bf16 %v549_v19, %v547_v18 }
  0x28   :  { %1143 = vmatmul.mubr.msk.f32.gmra.mrb[4].mxu1 %vm96_vm0, %v44_v40  ;;  %227 = vmatprep.mubr.f32.mxu0 %v1645_v0  ;;  %v554_v27 = vld [vmem:[#allocation3 + $0xb8] sm:$0xff]  ;;  %v616_v28 = vld [vmem:[#allocation3 + $0x2a8] sm:$0xff]  ;;  %v551_v31 = vld [vmem:[#allocation3 + $0xa0] sm:$0xff]  ;;  %v1255_v33 = vpack.c.bf16 %v613_v24, %v611_v23 }
  0x29   :  { %388 = vmatprep.mubr.f32.mxu1 %v1645_v0  ;;  %1184 = vmatpush1.bf16.msra.mxu1 %v1183_v63  ;;  %v618_v29 = vld [vmem:[#allocation3 + $0x2b8] sm:$0xff]  ;;  %v47_v30 = vld [vmem:[%s2005_s0 + $0x28] sm:$0xff]  ;;  %v553_v32 = vld [vmem:[#allocation3 + $0xb0] sm:$0xff]  ;;  %v1193_v34 = vpack.c.bf16 %v554_v27, %v552_v25 }
  0x2a   :  { %1248 = vmatpush1.bf16.msra.mxu0 %v1247_v7  ;;  %1186 = vmatprep.subr.bf16.mxu1 %v1185_v8  ;;  %v1257_v35 = vpack.c.bf16 %v618_v29, %v616_v28  ;;  %v615_v36 = vld [vmem:[#allocation3 + $0x2a0] sm:$0xff]  ;;  %v617_v37 = vld [vmem:[#allocation3 + $0x2b0] sm:$0xff]  ;;  %v556_v38 = vld [vmem:[#allocation3 + $0xc8] sm:$0xff]  ;;  %v1195_v39 = vpack.c.bf16 %v553_v32, %v551_v31 }
  0x2b   :  { %1128 = vmatmul.mubr.msk.f32.gmra.mrb[6].mxu0 %vm96_vm0, %v45_v4  ;;  %1250 = vmatprep.subr.bf16.mxu0 %v1249_v9  ;;  %v558_v40 = vld [vmem:[#allocation3 + $0xd8] sm:$0xff]  ;;  %v620_v41 = vld [vmem:[#allocation3 + $0x2c8] sm:$0xff]  ;;  %v48_v43 = vld [vmem:[%s2005_s0 + $0x30] sm:$0xff]  ;;  %v1259_v46 = vpack.c.bf16 %v617_v37, %v615_v36 }
  0x2c   :  { %1144 = vmatmul.mubr.msk.f32.gmra.mrb[6].mxu1 %vm96_vm0, %v45_v4  ;;  %233 = vmatprep.mubr.f32.mxu0 %v1645_v0  ;;  %v622_v42 = vld [vmem:[#allocation3 + $0x2d8] sm:$0xff]  ;;  %v555_v44 = vld [vmem:[#allocation3 + $0xc0] sm:$0xff]  ;;  %v557_v45 = vld [vmem:[#allocation3 + $0xd0] sm:$0xff]  ;;  %v1197_v47 = vpack.c.bf16 %v558_v40, %v556_v38 }
  0x2d   :  { %394 = vmatprep.mubr.f32.mxu1 %v1645_v0  ;;  %1188 = vmatpush1.bf16.msra.mxu1 %v1187_v13  ;;  %v1261_v48 = vpack.c.bf16 %v622_v42, %v620_v41  ;;  %v619_v49 = vld [vmem:[#allocation3 + $0x2c0] sm:$0xff]  ;;  %v621_v50 = vld [vmem:[#allocation3 + $0x2d0] sm:$0xff]  ;;  %v560_v51 = vld [vmem:[#allocation3 + $0xe8] sm:$0xff]  ;;  %v1199_v52 = vpack.c.bf16 %v557_v45, %v555_v44 }
  0x2e   :  { %1252 = vmatpush1.bf16.msra.mxu0 %v1251_v20  ;;  %1190 = vmatprep.subr.bf16.mxu1 %v1189_v21  ;;  %v562_v53 = vld [vmem:[#allocation3 + $0xf8] sm:$0xff]  ;;  %v624_v54 = vld [vmem:[#allocation3 + $0x2e8] sm:$0xff]  ;;  %v559_v57 = vld [vmem:[#allocation3 + $0xe0] sm:$0xff]  ;;  %v1263_v59 = vpack.c.bf16 %v621_v50, %v619_v49 }
  0x2f   :  { %1129 = vmatmul.mubr.msk.f32.gmra.mrb[8].mxu0 %vm96_vm0, %v46_v17  ;;  %1254 = vmatprep.subr.bf16.mxu0 %v1253_v22  ;;  %v626_v55 = vld [vmem:[#allocation3 + $0x2f8] sm:$0xff]  ;;  %v561_v58 = vld [vmem:[#allocation3 + $0xf0] sm:$0xff]  ;;  %v1201_v60 = vpack.c.bf16 %v562_v53, %v560_v51  ;;  %v623_v62 = vld [vmem:[#allocation3 + $0x2e0] sm:$0xff] }
  0x30   :  { %1145 = vmatmul.mubr.msk.f32.gmra.mrb[8].mxu1 %vm96_vm0, %v46_v17  ;;  %239 = vmatprep.mubr.f32.mxu0 %v1645_v0  ;;  %v49_v56 = vld [vmem:[%s2005_s0 + $0x38] sm:$0xff]  ;;  %v1265_v61 = vpack.c.bf16 %v626_v55, %v624_v54  ;;  %v625_v63 = vld [vmem:[#allocation3 + $0x2f0] sm:$0xff]  ;;  %v564_v1 = vld [vmem:[#allocation3 + $0x108] sm:$0xff]  ;;  %v1203_v2 = vpack.c.bf16 %v561_v58, %v559_v57 }
  0x31   :  { %400 = vmatprep.mubr.f32.mxu1 %v1645_v0  ;;  %1192 = vmatpush1.bf16.msra.mxu1 %v1191_v26  ;;  %v566_v3 = vld [vmem:[#allocation3 + $0x118] sm:$0xff]  ;;  %v628_v4 = vld [vmem:[#allocation3 + $0x308] sm:$0xff]  ;;  %v50_v6 = vld [vmem:[%s2005_s0 + $0x40] sm:$0xff]  ;;  %v1267_v9 = vpack.c.bf16 %v625_v63, %v623_v62 }
  0x32   :  { %1256 = vmatpush1.bf16.msra.mxu0 %v1255_v33  ;;  %1194 = vmatprep.subr.bf16.mxu1 %v1193_v34  ;;  %v630_v5 = vld [vmem:[#allocation3 + $0x318] sm:$0xff]  ;;  %v563_v7 = vld [vmem:[#allocation3 + $0x100] sm:$0xff]  ;;  %v565_v8 = vld [vmem:[#allocation3 + $0x110] sm:$0xff]  ;;  %v1205_v10 = vpack.c.bf16 %v566_v3, %v564_v1 }
  0x33   :  { %1130 = vmatmul.mubr.msk.f32.gmra.mrb[10].mxu0 %vm96_vm0, %v47_v30  ;;  %1258 = vmatprep.subr.bf16.mxu0 %v1257_v35  ;;  %v1269_v11 = vpack.c.bf16 %v630_v5, %v628_v4  ;;  %v627_v12 = vld [vmem:[#allocation3 + $0x300] sm:$0xff]  ;;  %v629_v13 = vld [vmem:[#allocation3 + $0x310] sm:$0xff]  ;;  %v568_v14 = vld [vmem:[#allocation3 + $0x128] sm:$0xff]  ;;  %v1207_v15 = vpack.c.bf16 %v565_v8, %v563_v7 }
  0x34   :  { %1146 = vmatmul.mubr.msk.f32.gmra.mrb[10].mxu1 %vm96_vm0, %v47_v30  ;;  %245 = vmatprep.mubr.f32.mxu0 %v1645_v0  ;;  %v570_v16 = vld [vmem:[#allocation3 + $0x138] sm:$0xff]  ;;  %v632_v17 = vld [vmem:[#allocation3 + $0x328] sm:$0xff]  ;;  %v567_v20 = vld [vmem:[#allocation3 + $0x120] sm:$0xff]  ;;  %v1271_v22 = vpack.c.bf16 %v629_v13, %v627_v12 }
  0x35   :  { %406 = vmatprep.mubr.f32.mxu1 %v1645_v0  ;;  %1196 = vmatpush1.bf16.msra.mxu1 %v1195_v39  ;;  %v634_v18 = vld [vmem:[#allocation3 + $0x338] sm:$0xff]  ;;  %v51_v19 = vld [vmem:[%s2005_s0 + $0x48] sm:$0xff]  ;;  %v569_v21 = vld [vmem:[#allocation3 + $0x130] sm:$0xff]  ;;  %v1209_v23 = vpack.c.bf16 %v570_v16, %v568_v14 }
  0x36   :  { %1260 = vmatpush1.bf16.msra.mxu0 %v1259_v46  ;;  %1198 = vmatprep.subr.bf16.mxu1 %v1197_v47  ;;  %v1273_v24 = vpack.c.bf16 %v634_v18, %v632_v17  ;;  %v631_v25 = vld [vmem:[#allocation3 + $0x320] sm:$0xff]  ;;  %v633_v26 = vld [vmem:[#allocation3 + $0x330] sm:$0xff]  ;;  %v572_v27 = vld [vmem:[#allocation3 + $0x148] sm:$0xff]  ;;  %v1211_v28 = vpack.c.bf16 %v569_v21, %v567_v20 }
  0x37   :  { %1131 = vmatmul.mubr.msk.f32.gmra.mrb[12].mxu0 %vm96_vm0, %v48_v43  ;;  %1262 = vmatprep.subr.bf16.mxu0 %v1261_v48  ;;  %v574_v29 = vld [vmem:[#allocation3 + $0x158] sm:$0xff]  ;;  %v636_v30 = vld [vmem:[#allocation3 + $0x348] sm:$0xff]  ;;  %v52_v32 = vld [vmem:[%s2005_s0 + $0x50] sm:$0xff]  ;;  %v1275_v35 = vpack.c.bf16 %v633_v26, %v631_v25 }
  0x38   :  { %1147 = vmatmul.mubr.msk.f32.gmra.mrb[12].mxu1 %vm96_vm0, %v48_v43  ;;  %251 = vmatprep.mubr.f32.mxu0 %v1645_v0  ;;  %v638_v31 = vld [vmem:[#allocation3 + $0x358] sm:$0xff]  ;;  %v571_v33 = vld [vmem:[#allocation3 + $0x140] sm:$0xff]  ;;  %v573_v34 = vld [vmem:[#allocation3 + $0x150] sm:$0xff]  ;;  %v1213_v36 = vpack.c.bf16 %v574_v29, %v572_v27 }
  0x39   :  { %412 = vmatprep.mubr.f32.mxu1 %v1645_v0  ;;  %1200 = vmatpush1.bf16.msra.mxu1 %v1199_v52  ;;  %v1277_v37 = vpack.c.bf16 %v638_v31, %v636_v30  ;;  %v635_v38 = vld [vmem:[#allocation3 + $0x340] sm:$0xff]  ;;  %v637_v39 = vld [vmem:[#allocation3 + $0x350] sm:$0xff]  ;;  %v576_v40 = vld [vmem:[#allocation3 + $0x168] sm:$0xff]  ;;  %v1215_v41 = vpack.c.bf16 %v573_v34, %v571_v33 }
  0x3a   :  { %1264 = vmatpush1.bf16.msra.mxu0 %v1263_v59  ;;  %1202 = vmatprep.subr.bf16.mxu1 %v1201_v60  ;;  %v578_v42 = vld [vmem:[#allocation3 + $0x178] sm:$0xff]  ;;  %v640_v43 = vld [vmem:[#allocation3 + $0x368] sm:$0xff]  ;;  %v575_v46 = vld [vmem:[#allocation3 + $0x160] sm:$0xff]  ;;  %v1279_v48 = vpack.c.bf16 %v637_v39, %v635_v38 }
  0x3b   :  { %1132 = vmatmul.mubr.msk.f32.gmra.mrb[14].mxu0 %vm96_vm0, %v49_v56  ;;  %1266 = vmatprep.subr.bf16.mxu0 %v1265_v61  ;;  %v642_v44 = vld [vmem:[#allocation3 + $0x378] sm:$0xff]  ;;  %v577_v47 = vld [vmem:[#allocation3 + $0x170] sm:$0xff]  ;;  %v1217_v49 = vpack.c.bf16 %v578_v42, %v576_v40  ;;  %v639_v51 = vld [vmem:[#allocation3 + $0x360] sm:$0xff] }
  0x3c   :  { %1148 = vmatmul.mubr.msk.f32.gmra.mrb[14].mxu1 %vm96_vm0, %v49_v56  ;;  %257 = vmatprep.mubr.f32.mxu0 %v1645_v0  ;;  %v53_v45 = vld [vmem:[%s2005_s0 + $0x58] sm:$0xff]  ;;  %v1281_v50 = vpack.c.bf16 %v642_v44, %v640_v43  ;;  %v641_v52 = vld [vmem:[#allocation3 + $0x370] sm:$0xff]  ;;  %v1219_v53 = vpack.c.bf16 %v577_v47, %v575_v46  ;;  %v54_v54 = vld [vmem:[%s2005_s0 + $0x60] sm:$0xff]  ;;  %v76_v43 = vlaneseq }
  0x3d   :  { %418 = vmatprep.mubr.f32.mxu1 %v1645_v0  ;;  %1204 = vmatpush1.bf16.msra.mxu1 %v1203_v2  ;;  %v1283_v55 = vpack.c.bf16 %v641_v52, %v639_v51  ;;  %v55_v56 = vld [vmem:[%s2005_s0 + $0x68] sm:$0xff]  ;;  %v56_v57 = vld [vmem:[%s2005_s0 + $0x70] sm:$0xff]  ;;  %v57_v58 = vld [vmem:[%s2005_s0 + $0x78] sm:$0xff] }
  0x3e   :  { %1268 = vmatpush1.bf16.msra.mxu0 %v1267_v9  ;;  %1206 = vmatprep.subr.bf16.mxu1 %v1205_v10  ;;  %v580_v59 = vld [vmem:[#allocation3 + $0x188] sm:$0xff]  ;;  %v582_v60 = vld [vmem:[#allocation3 + $0x198] sm:$0xff]  ;;  %v579_v2 = vld [vmem:[#allocation3 + $0x180] sm:$0xff]  ;;  %v77_v44 = vshrl.u32 %v76_v43, 7 }
  0x3f   :  { %1133 = vmatmul.mubr.msk.f32.gmra.mrb[16].mxu0 %vm96_vm0, %v50_v6  ;;  %1270 = vmatprep.subr.bf16.mxu0 %v1269_v11  ;;  %v644_v61 = vld [vmem:[#allocation3 + $0x388] sm:$0xff]  ;;  %v1221_v62 = vpack.c.bf16 %v582_v60, %v580_v59  ;;  %v646_v63 = vld [vmem:[#allocation3 + $0x398] sm:$0xff]  ;;  %v581_v3 = vld [vmem:[#allocation3 + $0x190] sm:$0xff] }
  0x40   :  { %1149 = vmatmul.mubr.msk.f32.gmra.mrb[16].mxu1 %vm96_vm0, %v50_v6  ;;  %263 = vmatprep.mubr.f32.mxu0 %v1645_v0  ;;  %v1285_v1 = vpack.c.bf16 %v646_v63, %v644_v61  ;;  %v643_v4 = vld [vmem:[#allocation3 + $0x380] sm:$0xff]  ;;  %v1223_v5 = vpack.c.bf16 %v581_v3, %v579_v2  ;;  %v645_v6 = vld [vmem:[#allocation3 + $0x390] sm:$0xff]  ;;  %v586_v8 = vld [vmem:[#allocation3 + $0x1b8] sm:$0xff]  ;;  %v86_v47 = vsub.s32 2, %v77_v44 }
  0x41   :  { %424 = vmatprep.mubr.f32.mxu1 %v1645_v0  ;;  %1208 = vmatpush1.bf16.msra.mxu1 %v1207_v15  ;;  %v1287_v7 = vpack.c.bf16 %v645_v6, %v643_v4  ;;  %v648_v9 = vld [vmem:[#allocation3 + $0x3a8] sm:$0xff]  ;;  %v650_v11 = vld [vmem:[#allocation3 + $0x3b8] sm:$0xff]  ;;  %v583_v12 = vld [vmem:[#allocation3 + $0x1a0] sm:$0xff] }
  0x42   :  { %1272 = vmatpush1.bf16.msra.mxu0 %v1271_v22  ;;  %1210 = vmatprep.subr.bf16.mxu1 %v1209_v23  ;;  %v585_v13 = vld [vmem:[#allocation3 + $0x1b0] sm:$0xff]  ;;  %v1289_v14 = vpack.c.bf16 %v650_v11, %v648_v9  ;;  %v647_v16 = vld [vmem:[#allocation3 + $0x3a0] sm:$0xff]  ;;  %v590_v20 = vld [vmem:[#allocation3 + $0x1d8] sm:$0xff] }
  0x43   :  { %1134 = vmatmul.mubr.msk.f32.gmra.mrb[18].mxu0 %vm96_vm0, %v51_v19  ;;  %1274 = vmatprep.subr.bf16.mxu0 %v1273_v24  ;;  %v1227_v15 = vpack.c.bf16 %v585_v13, %v583_v12  ;;  %v649_v17 = vld [vmem:[#allocation3 + $0x3b0] sm:$0xff]  ;;  %v652_v21 = vld [vmem:[#allocation3 + $0x3c8] sm:$0xff]  ;;  %v654_v23 = vld [vmem:[#allocation3 + $0x3d8] sm:$0xff] }
  0x44   :  { %1150 = vmatmul.mubr.msk.f32.gmra.mrb[18].mxu1 %vm96_vm0, %v51_v19  ;;  %269 = vmatprep.mubr.f32.mxu0 %v1645_v0  ;;  %v1291_v18 = vpack.c.bf16 %v649_v17, %v647_v16  ;;  %v588_v19 = vld [vmem:[#allocation3 + $0x1c8] sm:$0xff]  ;;  %v587_v24 = vld [vmem:[#allocation3 + $0x1c0] sm:$0xff]  ;;  %v589_v25 = vld [vmem:[#allocation3 + $0x1d0] sm:$0xff]  ;;  %v1293_v26 = vpack.c.bf16 %v654_v23, %v652_v21 }
  0x45   :  { %430 = vmatprep.mubr.f32.mxu1 %v1645_v0  ;;  %1212 = vmatpush1.bf16.msra.mxu1 %v1211_v28  ;;  %v1229_v22 = vpack.c.bf16 %v590_v20, %v588_v19  ;;  %v1231_v27 = vpack.c.bf16 %v589_v25, %v587_v24  ;;  %v651_v28 = vld [vmem:[#allocation3 + $0x3c0] sm:$0xff]  ;;  %v653_v29 = vld [vmem:[#allocation3 + $0x3d0] sm:$0xff]  ;;  %v592_v31 = vld [vmem:[#allocation3 + $0x1e8] sm:$0xff] }
  0x46   :  { %1276 = vmatpush1.bf16.msra.mxu0 %v1275_v35  ;;  %1214 = vmatprep.subr.bf16.mxu1 %v1213_v36  ;;  %v1295_v30 = vpack.c.bf16 %v653_v29, %v651_v28  ;;  %v656_v33 = vld [vmem:[#allocation3 + $0x3e8] sm:$0xff]  ;;  %v658_v35 = vld [vmem:[#allocation3 + $0x3f8] sm:$0xff]  ;;  %v591_v36 = vld [vmem:[#allocation3 + $0x1e0] sm:$0xff] }
  0x47   :  { %1135 = vmatmul.mubr.msk.f32.gmra.mrb[20].mxu0 %vm96_vm0, %v52_v32  ;;  %1278 = vmatprep.subr.bf16.mxu0 %v1277_v37  ;;  %v593_v37 = vld [vmem:[#allocation3 + $0x1f0] sm:$0xff]  ;;  %v1297_v38 = vpack.c.bf16 %v658_v35, %v656_v33  ;;  %v655_v40 = vld [vmem:[#allocation3 + $0x3e0] sm:$0xff] }
  0x48   :  { %1151 = vmatmul.mubr.msk.f32.gmra.mrb[20].mxu1 %vm96_vm0, %v52_v32  ;;  %275 = vmatprep.mubr.f32.mxu0 %v1645_v0  ;;  %v594_v32 = vld [vmem:[#allocation3 + $0x1f8] sm:$0xff]  ;;  %v1235_v39 = vpack.c.bf16 %v593_v37, %v591_v36  ;;  %v74_v46 = vld [vmem:[%s2007_s2] sm:$0xf] }
  0x49   :  { %436 = vmatprep.mubr.f32.mxu1 %v1645_v0  ;;  %1216 = vmatpush1.bf16.msra.mxu1 %v1215_v41  ;;  %v1233_v34 = vpack.c.bf16 %v594_v32, %v592_v31  ;;  %v657_v41 = vld [vmem:[#allocation3 + $0x3f0] sm:$0xff]  ;;  %v1869_v51 = vrot.slane %v74_v46, %v86_v47 }
  0x4a   :  { %1280 = vmatpush1.bf16.msra.mxu0 %v1279_v48  ;;  %1218 = vmatprep.subr.bf16.mxu1 %v1217_v49  ;;  %v1299_v42 = vpack.c.bf16 %v657_v41, %v655_v40  ;;  %v1864_v48 = vsub.s32 1, %v77_v44  ;;  %v90_v49 = vsub.s32 3, %v77_v44 }
  0x4b   :  { %1136 = vmatmul.mubr.msk.f32.gmra.mrb[22].mxu0 %vm96_vm0, %v53_v45  ;;  %1282 = vmatprep.subr.bf16.mxu0 %v1281_v50 }
  0x4c   :  { %1152 = vmatmul.mubr.msk.f32.gmra.mrb[22].mxu1 %vm96_vm0, %v53_v45  ;;  %281 = vmatprep.mubr.f32.mxu0 %v1645_v0  ;;  %v1859_v45 = vsub.s32 0, %v77_v44  ;;  %v1872_v52 = vrot.slane %v74_v46, %v1864_v48 }
  0x4d   :  { %442 = vmatprep.mubr.f32.mxu1 %v1645_v0  ;;  %1220 = vmatpush1.bf16.msra.mxu1 %v1219_v53  ;;  %v1874_v53 = vrot.slane %v74_v46, %v90_v49 }
  0x4e   :  { %1284 = vmatpush1.bf16.msra.mxu0 %v1283_v55  ;;  %1222 = vmatprep.subr.bf16.mxu1 %v1221_v62  ;;  %v1867_v50 = vrot.slane %v74_v46, %v1859_v45 }
  0x4f   :  { %1137 = vmatmul.mubr.msk.f32.gmra.mrb[24].mxu0 %vm96_vm0, %v54_v54  ;;  %1286 = vmatprep.subr.bf16.mxu0 %v1285_v1 }
  0x50   :  { %1153 = vmatmul.mubr.msk.f32.gmra.mrb[24].mxu1 %vm96_vm0, %v54_v54  ;;  %287 = vmatprep.mubr.f32.mxu0 %v1645_v0 }
  0x51   :  { %448 = vmatprep.mubr.f32.mxu1 %v1645_v0  ;;  %1224 = vmatpush1.bf16.msra.mxu1 %v1223_v5 }
  0x52   :  { %1288 = vmatpush1.bf16.msra.mxu0 %v1287_v7 }
  0x53   :  { %1138 = vmatmul.mubr.msk.f32.gmra.mrb[26].mxu0 %vm96_vm0, %v55_v56  ;;  %1290 = vmatprep.subr.bf16.mxu0 %v1289_v14 }
  0x54   :  { %1154 = vmatmul.mubr.msk.f32.gmra.mrb[26].mxu1 %vm96_vm0, %v55_v56  ;;  %293 = vmatprep.mubr.f32.mxu0 %v1645_v0 }
  0x55   :  { %454 = vmatprep.mubr.f32.mxu1 %v1645_v0 }
  0x56   :  { %1292 = vmatpush1.bf16.msra.mxu0 %v1291_v18 }
  0x57   :  { %1139 = vmatmul.mubr.msk.f32.gmra.mrb[28].mxu0 %vm96_vm0, %v56_v57  ;;  %1294 = vmatprep.subr.bf16.mxu0 %v1293_v26 }
  0x58   :  { %1155 = vmatmul.mubr.msk.f32.gmra.mrb[28].mxu1 %vm96_vm0, %v56_v57  ;;  %299 = vmatprep.mubr.f32.mxu0 %v1645_v0 }
  0x59   :  { %460 = vmatprep.mubr.f32.mxu1 %v1645_v0  ;;  %v584_v0 = vld [vmem:[#allocation3 + $0x1a8] sm:$0xff] }
  0x5a   :  { %v1225_v10 = vpack.c.bf16 %v586_v8, %v584_v0  ;;  %1296 = vmatpush1.bf16.msra.mxu0 %v1295_v30 }
  0x5b   :  { %1140 = vmatmul.mubr.msk.f32.gmra.mrb[30].mxu0 %vm96_vm0, %v57_v58  ;;  %1298 = vmatprep.subr.bf16.mxu0 %v1297_v38 }
  0x5c   :  { %1156 = vmatmul.mubr.msk.f32.gmra.mrb[30].mxu1 %vm96_vm0, %v57_v58  ;;  %1226 = vmatprep.subr.bf16.mxu1 %v1225_v10 }
  0x5d   :  { %1228 = vmatpush1.bf16.msra.mxu1 %v1227_v15 }
  0x5e   :  { %1230 = vmatprep.subr.bf16.mxu1 %v1229_v22  ;;  %1300 = vmatpush1.bf16.msra.mxu0 %v1299_v42 }
  0x61   :  { %1232 = vmatpush1.bf16.msra.mxu1 %v1231_v27 }
  0x62   :  { %1234 = vmatprep.subr.bf16.mxu1 %v1233_v34 }
  0x65   :  { %1236 = vmatpush1.bf16.msra.mxu1 %v1235_v39 }
  0xf2   :  { %v211_v54 = vpop.f32.mrb[0].mxu0 }
  0xf3   :  { %v212_v55 = vadd.f32 %v211_v54, %v1867_v50  ;;  %v372_v56 = vpop.f32.mrb[0].mxu1  ;;  %v213_v57 = vpop.f32.mrb[1].mxu0 }
  0xf4   :  { %v373_v58 = vadd.f32 %v372_v56, %v1869_v51  ;;  %v214_v59 = vadd.f32 %v213_v57, %v1872_v52  ;;  %v374_v60 = vpop.f32.mrb[1].mxu1 }
  0xf5   :  { %1402 = vtanh.f32 %v212_v55  ;;  %v375_v61 = vadd.f32 %v374_v60, %v1874_v53 }
  0xf6   :  { %1404 = vtanh.f32 %v373_v58  ;;  %v217_v62 = vpop.f32.mrb[2].mxu0 }
  0xf7   :  { %1406 = vtanh.f32 %v214_v59  ;;  %v218_v63 = vadd.f32 %v217_v62, %v1867_v50  ;;  %v378_v1 = vpop.f32.mrb[2].mxu1  ;;  %v219_v2 = vpop.f32.mrb[3].mxu0 }
  0xf8   :  { %1408 = vtanh.f32 %v375_v61  ;;  %v379_v3 = vadd.f32 %v378_v1, %v1869_v51  ;;  %v220_v4 = vadd.f32 %v219_v2, %v1872_v52  ;;  %v380_v5 = vpop.f32.mrb[3].mxu1 }
  0xf9   :  { %1410 = vtanh.f32 %v218_v63  ;;  %v381_v6 = vadd.f32 %v380_v5, %v1874_v53 }
  0xfa   :  { %1412 = vtanh.f32 %v379_v3  ;;  %v223_v7 = vpop.f32.mrb[4].mxu0 }
  0xfb   :  { %1414 = vtanh.f32 %v220_v4  ;;  %v224_v0 = vadd.f32 %v223_v7, %v1867_v50  ;;  %v384_v8 = vpop.f32.mrb[4].mxu1  ;;  %v225_v9 = vpop.f32.mrb[5].mxu0 }
  0xfc   :  { %1416 = vtanh.f32 %v381_v6  ;;  %v385_v10 = vadd.f32 %v384_v8, %v1869_v51  ;;  %v226_v11 = vadd.f32 %v225_v9, %v1872_v52  ;;  %v386_v12 = vpop.f32.mrb[5].mxu1 }
  0xfd   :  { %1418 = vtanh.f32 %v224_v0  ;;  %v387_v13 = vadd.f32 %v386_v12, %v1874_v53 }
  0xfe   :  { %1420 = vtanh.f32 %v385_v10  ;;  %v229_v14 = vpop.f32.mrb[6].mxu0 }
  0xff   :  { %v1403_v15 = vpop.eup %1402  ;;  %1422 = vtanh.f32 %v226_v11  ;;  %v230_v16 = vadd.f32 %v229_v14, %v1867_v50  ;;  %v390_v17 = vpop.f32.mrb[6].mxu1 }
 0x100   :  { %v231_v18 = vpop.f32.mrb[7].mxu0  ;;  %v1405_v19 = vpop.eup %1404  ;;  %1424 = vtanh.f32 %v387_v13  ;;  %v391_v20 = vadd.f32 %v390_v17, %v1869_v51 }
 0x101   :  { %v232_v21 = vadd.f32 %v231_v18, %v1872_v52  ;;  %v392_v22 = vpop.f32.mrb[7].mxu1  ;;  %v1407_v23 = vpop.eup %1406  ;;  %1426 = vtanh.f32 %v230_v16 }
 0x102   :  { %v393_v24 = vadd.f32 %v392_v22, %v1874_v53  ;;  %v1409_v25 = vpop.eup %1408  ;;  %1428 = vtanh.f32 %v391_v20  ;;  %735 = vmatprep.mubr.f32.mxu1 %v1407_v23  ;;  %v235_v26 = vpop.f32.mrb[8].mxu0 }
 0x103   :  { %v1411_v27 = vpop.eup %1410  ;;  %1430 = vtanh.f32 %v232_v21  ;;  %896 = vmatprep.mubr.f32.mxu0 %v1409_v25  ;;  %v236_v28 = vadd.f32 %v235_v26, %v1867_v50  ;;  %v396_v29 = vpop.f32.mrb[8].mxu1  ;;  %736 = vmatmul.mubr.f32.vlgmr.msra.gmra.mrb[32].mxu1 %v1403_v15 }
 0x104   :  { %v237_v30 = vpop.f32.mrb[9].mxu0  ;;  %v1413_v31 = vpop.eup %1412  ;;  %1432 = vtanh.f32 %v393_v24  ;;  %v397_v32 = vadd.f32 %v396_v29, %v1869_v51  ;;  %897 = vmatmul.mubr.f32.vlgmr.msra.gmra.mrb[32].mxu0 %v1405_v19 }
 0x105   :  { %v238_v33 = vadd.f32 %v237_v30, %v1872_v52  ;;  %v398_v34 = vpop.f32.mrb[9].mxu1  ;;  %v1415_v35 = vpop.eup %1414  ;;  %1434 = vtanh.f32 %v236_v28 }
 0x106   :  { %v399_v36 = vadd.f32 %v398_v34, %v1874_v53  ;;  %v1417_v37 = vpop.eup %1416  ;;  %1436 = vtanh.f32 %v397_v32  ;;  %741 = vmatprep.mubr.f32.mxu1 %v1415_v35  ;;  %v241_v38 = vpop.f32.mrb[10].mxu0 }
 0x107   :  { %v1419_v39 = vpop.eup %1418  ;;  %1438 = vtanh.f32 %v238_v33  ;;  %902 = vmatprep.mubr.f32.mxu0 %v1417_v37  ;;  %v242_v40 = vadd.f32 %v241_v38, %v1867_v50  ;;  %v402_v41 = vpop.f32.mrb[10].mxu1  ;;  %742 = vmatmul.mubr.f32.gmra.mrb[34].mxu1 %v1411_v27 }
 0x108   :  { %v243_v42 = vpop.f32.mrb[11].mxu0  ;;  %v1421_v43 = vpop.eup %1420  ;;  %1440 = vtanh.f32 %v399_v36  ;;  %v403_v44 = vadd.f32 %v402_v41, %v1869_v51  ;;  %903 = vmatmul.mubr.f32.gmra.mrb[34].mxu0 %v1413_v31 }
 0x109   :  { %v244_v46 = vadd.f32 %v243_v42, %v1872_v52  ;;  %v404_v47 = vpop.f32.mrb[11].mxu1  ;;  %v1423_v49 = vpop.eup %1422  ;;  %1442 = vtanh.f32 %v242_v40 }
 0x10a   :  { %v405_v54 = vadd.f32 %v404_v47, %v1874_v53  ;;  %v1425_v55 = vpop.eup %1424  ;;  %1444 = vtanh.f32 %v403_v44  ;;  %747 = vmatprep.mubr.f32.mxu1 %v1423_v49  ;;  %v247_v56 = vpop.f32.mrb[12].mxu0 }
 0x10b   :  { %v1427_v57 = vpop.eup %1426  ;;  %1446 = vtanh.f32 %v244_v46  ;;  %908 = vmatprep.mubr.f32.mxu0 %v1425_v55  ;;  %v248_v58 = vadd.f32 %v247_v56, %v1867_v50  ;;  %v408_v59 = vpop.f32.mrb[12].mxu1  ;;  %748 = vmatmul.mubr.f32.gmra.mrb[36].mxu1 %v1419_v39 }
 0x10c   :  { %v249_v60 = vpop.f32.mrb[13].mxu0  ;;  %v1429_v61 = vpop.eup %1428  ;;  %1448 = vtanh.f32 %v405_v54  ;;  %v409_v62 = vadd.f32 %v408_v59, %v1869_v51  ;;  %909 = vmatmul.mubr.f32.gmra.mrb[36].mxu0 %v1421_v43 }
 0x10d   :  { %v250_v63 = vadd.f32 %v249_v60, %v1872_v52  ;;  %v410_v1 = vpop.f32.mrb[13].mxu1  ;;  %v1431_v2 = vpop.eup %1430  ;;  %1450 = vtanh.f32 %v248_v58 }
 0x10e   :  { %v411_v3 = vadd.f32 %v410_v1, %v1874_v53  ;;  %v1433_v4 = vpop.eup %1432  ;;  %1452 = vtanh.f32 %v409_v62  ;;  %753 = vmatprep.mubr.f32.mxu1 %v1431_v2  ;;  %v253_v5 = vpop.f32.mrb[14].mxu0 }
 0x10f   :  { %v1435_v6 = vpop.eup %1434  ;;  %1454 = vtanh.f32 %v250_v63  ;;  %914 = vmatprep.mubr.f32.mxu0 %v1433_v4  ;;  %v254_v7 = vadd.f32 %v253_v5, %v1867_v50  ;;  %v414_v0 = vpop.f32.mrb[14].mxu1  ;;  %754 = vmatmul.mubr.f32.gmra.mrb[38].mxu1 %v1427_v57 }
 0x110   :  { %v255_v8 = vpop.f32.mrb[15].mxu0  ;;  %v1437_v9 = vpop.eup %1436  ;;  %1456 = vtanh.f32 %v411_v3  ;;  %v415_v10 = vadd.f32 %v414_v0, %v1869_v51  ;;  %915 = vmatmul.mubr.f32.gmra.mrb[38].mxu0 %v1429_v61 }
 0x111   :  { %v256_v11 = vadd.f32 %v255_v8, %v1872_v52  ;;  %v416_v12 = vpop.f32.mrb[15].mxu1  ;;  %v1439_v13 = vpop.eup %1438  ;;  %1458 = vtanh.f32 %v254_v7 }
 0x112   :  { %v417_v14 = vadd.f32 %v416_v12, %v1874_v53  ;;  %v1441_v15 = vpop.eup %1440  ;;  %1460 = vtanh.f32 %v415_v10  ;;  %759 = vmatprep.mubr.f32.mxu1 %v1439_v13  ;;  %v259_v16 = vpop.f32.mrb[16].mxu0 }
 0x113   :  { %v1443_v17 = vpop.eup %1442  ;;  %1462 = vtanh.f32 %v256_v11  ;;  %920 = vmatprep.mubr.f32.mxu0 %v1441_v15  ;;  %v260_v18 = vadd.f32 %v259_v16, %v1867_v50  ;;  %v420_v19 = vpop.f32.mrb[16].mxu1  ;;  %760 = vmatmul.mubr.f32.gmra.mrb[40].mxu1 %v1435_v6 }
 0x114   :  { %v261_v20 = vpop.f32.mrb[17].mxu0  ;;  %v1445_v21 = vpop.eup %1444  ;;  %1464 = vtanh.f32 %v417_v14  ;;  %v421_v22 = vadd.f32 %v420_v19, %v1869_v51  ;;  %921 = vmatmul.mubr.f32.gmra.mrb[40].mxu0 %v1437_v9 }
 0x115   :  { %v262_v23 = vadd.f32 %v261_v20, %v1872_v52  ;;  %v422_v24 = vpop.f32.mrb[17].mxu1  ;;  %v1447_v25 = vpop.eup %1446  ;;  %1466 = vtanh.f32 %v260_v18 }
 0x116   :  { %v423_v26 = vadd.f32 %v422_v24, %v1874_v53  ;;  %v1449_v27 = vpop.eup %1448  ;;  %1468 = vtanh.f32 %v421_v22  ;;  %765 = vmatprep.mubr.f32.mxu1 %v1447_v25  ;;  %v265_v28 = vpop.f32.mrb[18].mxu0 }
 0x117   :  { %v1451_v29 = vpop.eup %1450  ;;  %1470 = vtanh.f32 %v262_v23  ;;  %926 = vmatprep.mubr.f32.mxu0 %v1449_v27  ;;  %v266_v30 = vadd.f32 %v265_v28, %v1867_v50  ;;  %v426_v31 = vpop.f32.mrb[18].mxu1  ;;  %766 = vmatmul.mubr.f32.gmra.mrb[42].mxu1 %v1443_v17 }
 0x118   :  { %v267_v32 = vpop.f32.mrb[19].mxu0  ;;  %v1453_v33 = vpop.eup %1452  ;;  %1472 = vtanh.f32 %v423_v26  ;;  %v427_v34 = vadd.f32 %v426_v31, %v1869_v51  ;;  %927 = vmatmul.mubr.f32.gmra.mrb[42].mxu0 %v1445_v21 }
 0x119   :  { %v268_v35 = vadd.f32 %v267_v32, %v1872_v52  ;;  %v428_v36 = vpop.f32.mrb[19].mxu1  ;;  %v1455_v37 = vpop.eup %1454  ;;  %1474 = vtanh.f32 %v266_v30 }
 0x11a   :  { %v429_v38 = vadd.f32 %v428_v36, %v1874_v53  ;;  %v1457_v39 = vpop.eup %1456  ;;  %1476 = vtanh.f32 %v427_v34  ;;  %771 = vmatprep.mubr.f32.mxu1 %v1455_v37  ;;  %v271_v40 = vpop.f32.mrb[20].mxu0 }
 0x11b   :  { %v1459_v41 = vpop.eup %1458  ;;  %1478 = vtanh.f32 %v268_v35  ;;  %932 = vmatprep.mubr.f32.mxu0 %v1457_v39  ;;  %v272_v42 = vadd.f32 %v271_v40, %v1867_v50  ;;  %v432_v43 = vpop.f32.mrb[20].mxu1  ;;  %772 = vmatmul.mubr.f32.gmra.mrb[44].mxu1 %v1451_v29 }
 0x11c   :  { %v273_v44 = vpop.f32.mrb[21].mxu0  ;;  %v1461_v46 = vpop.eup %1460  ;;  %1480 = vtanh.f32 %v429_v38  ;;  %v433_v47 = vadd.f32 %v432_v43, %v1869_v51  ;;  %933 = vmatmul.mubr.f32.gmra.mrb[44].mxu0 %v1453_v33 }
 0x11d   :  { %v274_v49 = vadd.f32 %v273_v44, %v1872_v52  ;;  %v434_v54 = vpop.f32.mrb[21].mxu1  ;;  %v1463_v55 = vpop.eup %1462  ;;  %1482 = vtanh.f32 %v272_v42 }
 0x11e   :  { %v435_v56 = vadd.f32 %v434_v54, %v1874_v53  ;;  %v1465_v57 = vpop.eup %1464  ;;  %1484 = vtanh.f32 %v433_v47  ;;  %777 = vmatprep.mubr.f32.mxu1 %v1463_v55  ;;  %v277_v58 = vpop.f32.mrb[22].mxu0 }
 0x11f   :  { %v1467_v59 = vpop.eup %1466  ;;  %1486 = vtanh.f32 %v274_v49  ;;  %938 = vmatprep.mubr.f32.mxu0 %v1465_v57  ;;  %v278_v60 = vadd.f32 %v277_v58, %v1867_v50  ;;  %v438_v61 = vpop.f32.mrb[22].mxu1  ;;  %778 = vmatmul.mubr.f32.gmra.mrb[46].mxu1 %v1459_v41 }
 0x120   :  { %v279_v62 = vpop.f32.mrb[23].mxu0  ;;  %v1469_v63 = vpop.eup %1468  ;;  %1488 = vtanh.f32 %v435_v56  ;;  %v439_v1 = vadd.f32 %v438_v61, %v1869_v51  ;;  %939 = vmatmul.mubr.f32.gmra.mrb[46].mxu0 %v1461_v46 }
 0x121   :  { %v280_v2 = vadd.f32 %v279_v62, %v1872_v52  ;;  %v440_v3 = vpop.f32.mrb[23].mxu1  ;;  %v1471_v4 = vpop.eup %1470  ;;  %1490 = vtanh.f32 %v278_v60 }
 0x122   :  { %v441_v5 = vadd.f32 %v440_v3, %v1874_v53  ;;  %v1473_v6 = vpop.eup %1472  ;;  %1492 = vtanh.f32 %v439_v1  ;;  %783 = vmatprep.mubr.f32.mxu1 %v1471_v4  ;;  %v283_v7 = vpop.f32.mrb[24].mxu0 }
 0x123   :  { %v1475_v0 = vpop.eup %1474  ;;  %1494 = vtanh.f32 %v280_v2  ;;  %944 = vmatprep.mubr.f32.mxu0 %v1473_v6  ;;  %v284_v8 = vadd.f32 %v283_v7, %v1867_v50  ;;  %v444_v9 = vpop.f32.mrb[24].mxu1  ;;  %784 = vmatmul.mubr.f32.gmra.mrb[48].mxu1 %v1467_v59  ;;  %v659_v7 = vld [vmem:[%s2009_s4] sm:$0x3] }
 0x124   :  { %v285_v10 = vpop.f32.mrb[25].mxu0  ;;  %v1477_v11 = vpop.eup %1476  ;;  %1496 = vtanh.f32 %v441_v5  ;;  %v445_v12 = vadd.f32 %v444_v9, %v1869_v51  ;;  %945 = vmatmul.mubr.f32.gmra.mrb[48].mxu0 %v1469_v63  ;;  %v1943_v5 = vld [vmem:[%s2010_s5] sm:$0x3] }
 0x125   :  { %v286_v13 = vadd.f32 %v285_v10, %v1872_v52  ;;  %v446_v14 = vpop.f32.mrb[25].mxu1  ;;  %v1479_v15 = vpop.eup %1478  ;;  %1498 = vtanh.f32 %v284_v8  ;;  %v1036_v6 = vrot.slane %v1943_v5, %v1864_v48  ;;  %v1954_v8 = vrot.slane %v659_v7, %v1864_v48 }
 0x126   :  { %v447_v16 = vadd.f32 %v446_v14, %v1874_v53  ;;  %v1481_v17 = vpop.eup %1480  ;;  %1500 = vtanh.f32 %v445_v12  ;;  %789 = vmatprep.mubr.f32.mxu1 %v1479_v15  ;;  %v289_v18 = vpop.f32.mrb[26].mxu0 }
 0x127   :  { %v1483_v19 = vpop.eup %1482  ;;  %1502 = vtanh.f32 %v286_v13  ;;  %950 = vmatprep.mubr.f32.mxu0 %v1481_v17  ;;  %v290_v20 = vadd.f32 %v289_v18, %v1867_v50  ;;  %v450_v21 = vpop.f32.mrb[26].mxu1  ;;  %790 = vmatmul.mubr.f32.gmra.mrb[50].mxu1 %v1475_v0  ;;  %v1951_v0 = vrot.slane %v659_v7, %v1859_v45 }
 0x128   :  { %v291_v22 = vpop.f32.mrb[27].mxu0  ;;  %v1485_v23 = vpop.eup %1484  ;;  %1504 = vtanh.f32 %v447_v16  ;;  %v451_v24 = vadd.f32 %v450_v21, %v1869_v51  ;;  %951 = vmatmul.mubr.f32.gmra.mrb[50].mxu0 %v1477_v11 }
 0x129   :  { %v292_v25 = vadd.f32 %v291_v22, %v1872_v52  ;;  %v452_v26 = vpop.f32.mrb[27].mxu1  ;;  %v1487_v27 = vpop.eup %1486  ;;  %1506 = vtanh.f32 %v290_v20 }
 0x12a   :  { %v453_v28 = vadd.f32 %v452_v26, %v1874_v53  ;;  %v1489_v29 = vpop.eup %1488  ;;  %1508 = vtanh.f32 %v451_v24  ;;  %795 = vmatprep.mubr.f32.mxu1 %v1487_v27  ;;  %v295_v30 = vpop.f32.mrb[28].mxu0 }
 0x12b   :  { %v1491_v31 = vpop.eup %1490  ;;  %1510 = vtanh.f32 %v292_v25  ;;  %956 = vmatprep.mubr.f32.mxu0 %v1489_v29  ;;  %v296_v32 = vadd.f32 %v295_v30, %v1867_v50  ;;  %v456_v33 = vpop.f32.mrb[28].mxu1  ;;  %796 = vmatmul.mubr.f32.gmra.mrb[52].mxu1 %v1483_v19 }
 0x12c   :  { %v297_v34 = vpop.f32.mrb[29].mxu0  ;;  %v1493_v35 = vpop.eup %1492  ;;  %1512 = vtanh.f32 %v453_v28  ;;  %v457_v36 = vadd.f32 %v456_v33, %v1869_v51  ;;  %957 = vmatmul.mubr.f32.gmra.mrb[52].mxu0 %v1485_v23 }
 0x12d   :  { %v298_v37 = vadd.f32 %v297_v34, %v1872_v52  ;;  %v458_v38 = vpop.f32.mrb[29].mxu1  ;;  %v1495_v39 = vpop.eup %1494  ;;  %1514 = vtanh.f32 %v296_v32 }
 0x12e   :  { %v459_v40 = vadd.f32 %v458_v38, %v1874_v53  ;;  %v1497_v41 = vpop.eup %1496  ;;  %1516 = vtanh.f32 %v457_v36  ;;  %801 = vmatprep.mubr.f32.mxu1 %v1495_v39  ;;  %v301_v42 = vpop.f32.mrb[30].mxu0 }
 0x12f   :  { %v1499_v43 = vpop.eup %1498  ;;  %1518 = vtanh.f32 %v298_v37  ;;  %962 = vmatprep.mubr.f32.mxu0 %v1497_v41  ;;  %v302_v44 = vadd.f32 %v301_v42, %v1867_v50  ;;  %v462_v46 = vpop.f32.mrb[30].mxu1  ;;  %802 = vmatmul.mubr.f32.gmra.mrb[54].mxu1 %v1491_v31 }
 0x130   :  { %v303_v47 = vpop.f32.mrb[31].mxu0  ;;  %v1501_v49 = vpop.eup %1500  ;;  %1520 = vtanh.f32 %v459_v40  ;;  %v463_v54 = vadd.f32 %v462_v46, %v1869_v51  ;;  %963 = vmatmul.mubr.f32.gmra.mrb[54].mxu0 %v1493_v35 }
 0x131   :  { %v304_v55 = vadd.f32 %v303_v47, %v1872_v52  ;;  %v464_v56 = vpop.f32.mrb[31].mxu1  ;;  %v1503_v57 = vpop.eup %1502  ;;  %1522 = vtanh.f32 %v302_v44 }
 0x132   :  { %v465_v58 = vadd.f32 %v464_v56, %v1874_v53  ;;  %v1505_v59 = vpop.eup %1504  ;;  %1524 = vtanh.f32 %v463_v54  ;;  %807 = vmatprep.mubr.f32.mxu1 %v1503_v57 }
 0x133   :  { %v1507_v60 = vpop.eup %1506  ;;  %1526 = vtanh.f32 %v304_v55  ;;  %968 = vmatprep.mubr.f32.mxu0 %v1505_v59  ;;  %808 = vmatmul.mubr.f32.gmra.mrb[56].mxu1 %v1499_v43 }
 0x134   :  { %v1509_v50 = vpop.eup %1508  ;;  %1528 = vtanh.f32 %v465_v58  ;;  %969 = vmatmul.mubr.f32.gmra.mrb[56].mxu0 %v1501_v49 }
 0x135   :  { %v1511_v61 = vpop.eup %1510 }
 0x136   :  { %v1513_v51 = vpop.eup %1512  ;;  %813 = vmatprep.mubr.f32.mxu1 %v1511_v61 }
 0x137   :  { %v1515_v62 = vpop.eup %1514  ;;  %974 = vmatprep.mubr.f32.mxu0 %v1513_v51  ;;  %814 = vmatmul.mubr.f32.gmra.mrb[58].mxu1 %v1507_v60 }
 0x138   :  { %v1517_v52 = vpop.eup %1516  ;;  %975 = vmatmul.mubr.f32.gmra.mrb[58].mxu0 %v1509_v50 }
 0x139   :  { %v1519_v63 = vpop.eup %1518 }
 0x13a   :  { %v1521_v53 = vpop.eup %1520  ;;  %819 = vmatprep.mubr.f32.mxu1 %v1519_v63 }
 0x13b   :  { %v1523_v1 = vpop.eup %1522  ;;  %980 = vmatprep.mubr.f32.mxu0 %v1521_v53  ;;  %820 = vmatmul.mubr.f32.gmra.mrb[60].mxu1 %v1515_v62 }
 0x13c   :  { %v1525_v2 = vpop.eup %1524  ;;  %981 = vmatmul.mubr.f32.gmra.mrb[60].mxu0 %v1517_v52 }
 0x13d   :  { %v1527_v3 = vpop.eup %1526 }
 0x13e   :  { %v1529_v4 = vpop.eup %1528  ;;  %825 = vmatprep.mubr.f32.mxu1 %v1527_v3 }
 0x13f   :  { %986 = vmatprep.mubr.f32.mxu0 %v1529_v4  ;;  %826 = vmatmul.mubr.f32.gmra.mrb[62].mxu1 %v1523_v1 }
 0x140   :  { %987 = vmatmul.mubr.f32.gmra.mrb[62].mxu0 %v1525_v2  ;;  %1103 = vmatprep.mubr.f32.mxu1 %v1036_v6 }
 0x1d6   :  { %v737_v9 = vpop.f32.mrb[32].mxu1 }
 0x1d7   :  { %v738_v10 = vadd.f32 %v737_v9, %v1951_v0  ;;  %v898_v11 = vpop.f32.mrb[32].mxu0  ;;  %v739_v12 = vpop.f32.mrb[33].mxu1 }
 0x1d8   :  { %v740_v13 = vadd.f32 %v739_v12, %v1954_v8  ;;  %v900_v14 = vpop.f32.mrb[33].mxu0 }
 0x1d9   :  { %v899_v15 = vadd.f32 %v898_v11, %v738_v10 }
 0x1da   :  { %v901_v16 = vadd.f32 %v900_v14, %v740_v13  ;;  %v743_v17 = vpop.f32.mrb[34].mxu1 }
 0x1db   :  { %v744_v18 = vadd.f32 %v743_v17, %v1951_v0  ;;  %v904_v19 = vpop.f32.mrb[34].mxu0  ;;  %v745_v20 = vpop.f32.mrb[35].mxu1  ;;  %1530 = vtanh.f32 %v899_v15 }
 0x1dc   :  { %v746_v21 = vadd.f32 %v745_v20, %v1954_v8  ;;  %v906_v22 = vpop.f32.mrb[35].mxu0  ;;  %1532 = vtanh.f32 %v901_v16 }
 0x1dd   :  { %v905_v48 = vadd.f32 %v904_v19, %v744_v18 }
 0x1de   :  { %v907_v23 = vadd.f32 %v906_v22, %v746_v21  ;;  %v749_v24 = vpop.f32.mrb[36].mxu1 }
 0x1df   :  { %1534 = vtanh.f32 %v905_v48  ;;  %v750_v25 = vadd.f32 %v749_v24, %v1951_v0  ;;  %v910_v26 = vpop.f32.mrb[36].mxu0  ;;  %v751_v27 = vpop.f32.mrb[37].mxu1 }
 0x1e0   :  { %1536 = vtanh.f32 %v907_v23  ;;  %v752_v28 = vadd.f32 %v751_v27, %v1954_v8  ;;  %v912_v29 = vpop.f32.mrb[37].mxu0 }
 0x1e1   :  { %v911_v30 = vadd.f32 %v910_v26, %v750_v25 }
 0x1e2   :  { %v913_v31 = vadd.f32 %v912_v29, %v752_v28  ;;  %v755_v32 = vpop.f32.mrb[38].mxu1 }
 0x1e3   :  { %v756_v33 = vadd.f32 %v755_v32, %v1951_v0  ;;  %v916_v34 = vpop.f32.mrb[38].mxu0  ;;  %v757_v35 = vpop.f32.mrb[39].mxu1  ;;  %1538 = vtanh.f32 %v911_v30 }
 0x1e4   :  { %v758_v36 = vadd.f32 %v757_v35, %v1954_v8  ;;  %v918_v37 = vpop.f32.mrb[39].mxu0  ;;  %1540 = vtanh.f32 %v913_v31 }
 0x1e5   :  { %v917_v38 = vadd.f32 %v916_v34, %v756_v33  ;;  %v1531_v41 = vpop.eup %1530 }
 0x1e6   :  { %v919_v39 = vadd.f32 %v918_v37, %v758_v36  ;;  %v761_v40 = vpop.f32.mrb[40].mxu1  ;;  %v1533_v46 = vpop.eup %1532 }
 0x1e7   :  { %1542 = vtanh.f32 %v917_v38  ;;  %v762_v42 = vadd.f32 %v761_v40, %v1951_v0  ;;  %v922_v43 = vpop.f32.mrb[40].mxu0  ;;  %v763_v44 = vpop.f32.mrb[41].mxu1 }
 0x1e8   :  { %1544 = vtanh.f32 %v919_v39  ;;  %v764_v47 = vadd.f32 %v763_v44, %v1954_v8  ;;  %v924_v49 = vpop.f32.mrb[41].mxu0 }
 0x1e9   :  { %v1535_v54 = vpop.eup %1534  ;;  %v923_v55 = vadd.f32 %v922_v43, %v762_v42 }
 0x1ea   :  { %v1537_v56 = vpop.eup %1536  ;;  %v925_v57 = vadd.f32 %v924_v49, %v764_v47  ;;  %v767_v58 = vpop.f32.mrb[42].mxu1  ;;  %v1303_v59 = vpack.c.bf16 %v1535_v54, %v1531_v41 }
 0x1eb   :  { %v768_v60 = vadd.f32 %v767_v58, %v1951_v0  ;;  %v928_v50 = vpop.f32.mrb[42].mxu0  ;;  %v769_v61 = vpop.f32.mrb[43].mxu1  ;;  %v1301_v51 = vpack.c.bf16 %v1537_v56, %v1533_v46  ;;  %1546 = vtanh.f32 %v923_v55 }
 0x1ec   :  { %v770_v62 = vadd.f32 %v769_v61, %v1954_v8  ;;  %v930_v52 = vpop.f32.mrb[43].mxu0  ;;  %1548 = vtanh.f32 %v925_v57 }
 0x1ed   :  { %v929_v63 = vadd.f32 %v928_v50, %v768_v60  ;;  %1302 = vmatprep.subr.bf16.mxu1 %v1301_v51  ;;  %v1539_v2 = vpop.eup %1538 }
 0x1ee   :  { %v931_v53 = vadd.f32 %v930_v52, %v770_v62  ;;  %v773_v1 = vpop.f32.mrb[44].mxu1  ;;  %1304 = vmatpush1.bf16.xpose.msra.mxu1 %v1303_v59  ;;  %v1541_v7 = vpop.eup %1540 }
 0x1ef   :  { %1550 = vtanh.f32 %v929_v63  ;;  %v774_v3 = vadd.f32 %v773_v1, %v1951_v0  ;;  %v934_v4 = vpop.f32.mrb[44].mxu0  ;;  %v775_v6 = vpop.f32.mrb[45].mxu1 }
 0x1f0   :  { %1552 = vtanh.f32 %v931_v53  ;;  %v776_v9 = vadd.f32 %v775_v6, %v1954_v8  ;;  %v936_v10 = vpop.f32.mrb[45].mxu0 }
 0x1f1   :  { %v1543_v11 = vpop.eup %1542  ;;  %v935_v12 = vadd.f32 %v934_v4, %v774_v3 }
 0x1f2   :  { %v1545_v13 = vpop.eup %1544  ;;  %v937_v14 = vadd.f32 %v936_v10, %v776_v9  ;;  %v779_v15 = vpop.f32.mrb[46].mxu1  ;;  %v1307_v16 = vpack.c.bf16 %v1543_v11, %v1539_v2 }
 0x1f3   :  { %v780_v17 = vadd.f32 %v779_v15, %v1951_v0  ;;  %v940_v18 = vpop.f32.mrb[46].mxu0  ;;  %v781_v19 = vpop.f32.mrb[47].mxu1  ;;  %v1305_v20 = vpack.c.bf16 %v1545_v13, %v1541_v7  ;;  %1554 = vtanh.f32 %v935_v12 }
 0x1f4   :  { %v782_v21 = vadd.f32 %v781_v19, %v1954_v8  ;;  %v942_v22 = vpop.f32.mrb[47].mxu0  ;;  %1556 = vtanh.f32 %v937_v14 }
 0x1f5   :  { %v941_v48 = vadd.f32 %v940_v18, %v780_v17  ;;  %1306 = vmatprep.subr.bf16.mxu1 %v1305_v20  ;;  %v1547_v25 = vpop.eup %1546 }
 0x1f6   :  { %v943_v23 = vadd.f32 %v942_v22, %v782_v21  ;;  %v785_v24 = vpop.f32.mrb[48].mxu1  ;;  %1308 = vmatpush1.bf16.xpose.msra.mxu1 %v1307_v16  ;;  %v1549_v29 = vpop.eup %1548 }
 0x1f7   :  { %1558 = vtanh.f32 %v941_v48  ;;  %v786_v26 = vadd.f32 %v785_v24, %v1951_v0  ;;  %v946_v27 = vpop.f32.mrb[48].mxu0  ;;  %v787_v28 = vpop.f32.mrb[49].mxu1 }
 0x1f8   :  { %1560 = vtanh.f32 %v943_v23  ;;  %v788_v30 = vadd.f32 %v787_v28, %v1954_v8  ;;  %v948_v31 = vpop.f32.mrb[49].mxu0 }
 0x1f9   :  { %v1551_v32 = vpop.eup %1550  ;;  %v947_v33 = vadd.f32 %v946_v27, %v786_v26 }
 0x1fa   :  { %v1553_v34 = vpop.eup %1552  ;;  %v949_v35 = vadd.f32 %v948_v31, %v788_v30  ;;  %v791_v36 = vpop.f32.mrb[50].mxu1  ;;  %v1311_v37 = vpack.c.bf16 %v1551_v32, %v1547_v25 }
 0x1fb   :  { %v792_v38 = vadd.f32 %v791_v36, %v1951_v0  ;;  %v952_v39 = vpop.f32.mrb[50].mxu0  ;;  %v793_v40 = vpop.f32.mrb[51].mxu1  ;;  %v1309_v41 = vpack.c.bf16 %v1553_v34, %v1549_v29  ;;  %1562 = vtanh.f32 %v947_v33 }
 0x1fc   :  { %v794_v42 = vadd.f32 %v793_v40, %v1954_v8  ;;  %v954_v43 = vpop.f32.mrb[51].mxu0  ;;  %1564 = vtanh.f32 %v949_v35 }
 0x1fd   :  { %v953_v44 = vadd.f32 %v952_v39, %v792_v38  ;;  %1310 = vmatprep.subr.bf16.mxu1 %v1309_v41  ;;  %v1555_v49 = vpop.eup %1554 }
 0x1fe   :  { %v955_v46 = vadd.f32 %v954_v43, %v794_v42  ;;  %v797_v47 = vpop.f32.mrb[52].mxu1  ;;  %1312 = vmatpush1.bf16.xpose.msra.mxu1 %v1311_v37  ;;  %v1557_v57 = vpop.eup %1556 }
 0x1ff   :  { %1566 = vtanh.f32 %v953_v44  ;;  %v798_v54 = vadd.f32 %v797_v47, %v1951_v0  ;;  %v958_v55 = vpop.f32.mrb[52].mxu0  ;;  %v799_v56 = vpop.f32.mrb[53].mxu1 }
 0x200   :  { %1568 = vtanh.f32 %v955_v46  ;;  %v800_v58 = vadd.f32 %v799_v56, %v1954_v8  ;;  %v960_v59 = vpop.f32.mrb[53].mxu0 }
 0x201   :  { %v1559_v60 = vpop.eup %1558  ;;  %v959_v50 = vadd.f32 %v958_v55, %v798_v54 }
 0x202   :  { %v1561_v61 = vpop.eup %1560  ;;  %v961_v51 = vadd.f32 %v960_v59, %v800_v58  ;;  %v803_v62 = vpop.f32.mrb[54].mxu1  ;;  %v1315_v52 = vpack.c.bf16 %v1559_v60, %v1555_v49 }
 0x203   :  { %v804_v63 = vadd.f32 %v803_v62, %v1951_v0  ;;  %v964_v53 = vpop.f32.mrb[54].mxu0  ;;  %v805_v1 = vpop.f32.mrb[55].mxu1  ;;  %v1313_v2 = vpack.c.bf16 %v1561_v61, %v1557_v57  ;;  %1570 = vtanh.f32 %v959_v50 }
 0x204   :  { %v806_v3 = vadd.f32 %v805_v1, %v1954_v8  ;;  %v966_v4 = vpop.f32.mrb[55].mxu0  ;;  %1572 = vtanh.f32 %v961_v51  ;;  %v1032_v1 = vrot.slane %v1943_v5, %v1859_v45 }
 0x205   :  { %v965_v6 = vadd.f32 %v964_v53, %v804_v63  ;;  %1314 = vmatprep.subr.bf16.mxu1 %v1313_v2  ;;  %v1563_v10 = vpop.eup %1562  ;;  %v1027_v2 = vstv %s2011_s6 }
 0x206   :  { %v967_v7 = vadd.f32 %v966_v4, %v806_v3  ;;  %v809_v9 = vpop.f32.mrb[56].mxu1  ;;  %1316 = vmatpush1.bf16.xpose.msra.mxu1 %v1315_v52  ;;  %v1565_v14 = vpop.eup %1564 }
 0x207   :  { %1574 = vtanh.f32 %v965_v6  ;;  %v810_v11 = vadd.f32 %v809_v9, %v1951_v0  ;;  %v970_v12 = vpop.f32.mrb[56].mxu0  ;;  %v811_v13 = vpop.f32.mrb[57].mxu1 }
 0x208   :  { %1576 = vtanh.f32 %v967_v7  ;;  %v812_v15 = vadd.f32 %v811_v13, %v1954_v8  ;;  %v972_v16 = vpop.f32.mrb[57].mxu0 }
 0x209   :  { %v1567_v17 = vpop.eup %1566  ;;  %v971_v18 = vadd.f32 %v970_v12, %v810_v11 }
 0x20a   :  { %v1569_v19 = vpop.eup %1568  ;;  %v973_v20 = vadd.f32 %v972_v16, %v812_v15  ;;  %v815_v21 = vpop.f32.mrb[58].mxu1  ;;  %v1319_v22 = vpack.c.bf16 %v1567_v17, %v1563_v10 }
 0x20b   :  { %v816_v48 = vadd.f32 %v815_v21, %v1951_v0  ;;  %v976_v23 = vpop.f32.mrb[58].mxu0  ;;  %v817_v24 = vpop.f32.mrb[59].mxu1  ;;  %v1317_v25 = vpack.c.bf16 %v1569_v19, %v1565_v14  ;;  %1578 = vtanh.f32 %v971_v18 }
 0x20c   :  { %v818_v26 = vadd.f32 %v817_v24, %v1954_v8  ;;  %v978_v27 = vpop.f32.mrb[59].mxu0  ;;  %1580 = vtanh.f32 %v973_v20 }
 0x20d   :  { %v977_v28 = vadd.f32 %v976_v23, %v816_v48  ;;  %1318 = vmatprep.subr.bf16.mxu1 %v1317_v25  ;;  %v1571_v31 = vpop.eup %1570 }
 0x20e   :  { %v979_v29 = vadd.f32 %v978_v27, %v818_v26  ;;  %v821_v30 = vpop.f32.mrb[60].mxu1  ;;  %1320 = vmatpush1.bf16.xpose.msra.mxu1 %v1319_v22  ;;  %v1573_v35 = vpop.eup %1572 }
 0x20f   :  { %1582 = vtanh.f32 %v977_v28  ;;  %v822_v32 = vadd.f32 %v821_v30, %v1951_v0  ;;  %v982_v33 = vpop.f32.mrb[60].mxu0  ;;  %v823_v34 = vpop.f32.mrb[61].mxu1 }
 0x210   :  { %1584 = vtanh.f32 %v979_v29  ;;  %v824_v36 = vadd.f32 %v823_v34, %v1954_v8  ;;  %v984_v37 = vpop.f32.mrb[61].mxu0 }
 0x211   :  { %v1575_v38 = vpop.eup %1574  ;;  %v983_v39 = vadd.f32 %v982_v33, %v822_v32 }
 0x212   :  { %v1577_v40 = vpop.eup %1576  ;;  %v985_v41 = vadd.f32 %v984_v37, %v824_v36  ;;  %v827_v42 = vpop.f32.mrb[62].mxu1  ;;  %v1323_v43 = vpack.c.bf16 %v1575_v38, %v1571_v31 }
 0x213   :  { %v828_v44 = vadd.f32 %v827_v42, %v1951_v0  ;;  %v988_v46 = vpop.f32.mrb[62].mxu0  ;;  %v829_v47 = vpop.f32.mrb[63].mxu1  ;;  %v1321_v49 = vpack.c.bf16 %v1577_v40, %v1573_v35  ;;  %1586 = vtanh.f32 %v983_v39 }
 0x214   :  { %v830_v54 = vadd.f32 %v829_v47, %v1954_v8  ;;  %v990_v55 = vpop.f32.mrb[63].mxu0  ;;  %1588 = vtanh.f32 %v985_v41 }
 0x215   :  { %v989_v56 = vadd.f32 %v988_v46, %v828_v44  ;;  %1322 = vmatprep.subr.bf16.mxu1 %v1321_v49  ;;  %v1579_v58 = vpop.eup %1578 }
 0x216   :  { %v991_v57 = vadd.f32 %v990_v55, %v830_v54  ;;  %1324 = vmatpush1.bf16.xpose.msra.mxu1 %v1323_v43  ;;  %v1581_v59 = vpop.eup %1580 }
 0x217   :  { %1590 = vtanh.f32 %v989_v56 }
 0x218   :  { %1592 = vtanh.f32 %v991_v57 }
 0x219   :  { %v1583_v60 = vpop.eup %1582 }
 0x21a   :  { %v1585_v50 = vpop.eup %1584  ;;  %v1327_v61 = vpack.c.bf16 %v1583_v60, %v1579_v58 }
 0x21b   :  { %v1325_v0 = vpack.c.bf16 %v1585_v50, %v1581_v59 }
 0x21d   :  { %1326 = vmatprep.subr.bf16.mxu1 %v1325_v0  ;;  %v1587_v51 = vpop.eup %1586 }
 0x21e   :  { %1328 = vmatpush1.bf16.xpose.msra.mxu1 %v1327_v61  ;;  %v1589_v62 = vpop.eup %1588 }
 0x221   :  { %v1591_v8 = vpop.eup %1590 }
 0x222   :  { %v1593_v52 = vpop.eup %1592  ;;  %v1331_v63 = vpack.c.bf16 %v1591_v8, %v1587_v51 }
 0x223   :  { %v1329_v53 = vpack.c.bf16 %v1593_v52, %v1589_v62 }
 0x225   :  { %1330 = vmatprep.subr.bf16.mxu1 %v1329_v53 }
 0x226   :  { %1332 = vmatpush1.bf16.xpose.msra.mxu1 %v1331_v63 }
 0x22d   :  { %1104 = vmatmul.mubr.f32.vlgmr.msra.gmra.mrb[64].mxu1 %v1032_v1 }
 0x300   :  { %v1105_v3 = vpop.f32.mrb[64].mxu1 }
 0x301   :  { %v1106_v4 = vadd.f32 %v1105_v3, %v1027_v2  ;;  %v1107_v6 = vpop.f32.mrb[65].mxu1 }
 0x303   :  { %1109 = vst [vmem:[#allocation6] sm:$0x1] %v1106_v4 }
 0x304   :  { %1627 = shalt.err (!%p1624_p12)
}
 0x305   :  { %s1628_s15 = scalar_lea.hbm %s2012_s7, 16 }
 0x306   :  { %p1629_p13 = scmp.ne.s32.totalorder %s2012_s7, %s1628_s15  ;;  %p1632_p0 = scmp.lt.u32.totalorder %s1628_s15, %s2012_s7 }
 0x308   :  { %p1634_p1 = pnand %p1632_p0, %p1629_p13 }
 0x30a   :  { %1637 = shalt.err (!%p1634_p1)
}
 0x30b   :  { %1119 = dma.vmem_to_hbm [thread:$0]  %s1117_s10, 16, %s2012_s7, [#allocation5]  }
 0x30c   :  { %1640 = dma.done.wait [#allocation5], 16  }
 0x30d   :  { %1641 = vsyncadd [#allocation5], 4294967280 }
 0x30e   :  { %1123 = vsyncpa [#allocation4], 1 }
 0x30f   :  { %1124 = vsyncpa [#allocation5], 1 }

</bundles_post_ra>
